<compile_context>
chip_gen: v7x
topology: tpu7x:2x2x1
jax: 0.10.0
libtpu: 0.0.40
codegen_flags: <defaults>
</compile_context>

<pallas_src>
import numpy as np
import jax
import jax.numpy as jnp
from jax import lax
from jax.experimental import pallas as pl
from jax.experimental.pallas import tpu as pltpu

EPS = 1e-5


# ---------------------------------------------------------------------------
# Fused Pallas kernel (one batch image per grid step)
# ---------------------------------------------------------------------------

def _make_block_kernel(H, W, Cin, P, Cout, stride, Ho, Wo, shortcut):
    """Build the fused expand -> depthwise -> project (+shortcut) kernel."""
    HW = H * W
    HWo = Ho * Wo
    padw = -(-(W + 1) // 128) * 128          # lane-aligned halo pad (>= W+1)
    HI = lax.Precision.HIGHEST

    def compute(x_ref, w1_ref, b1_ref, w2_ref, b2_ref, m_ref,
                w3_ref, b3_ref, s_ref, o_ref):
        xt = x_ref[...]                                            # (Cin, HW)

        # ---- (1) expand 1x1 conv (BN folded) + ReLU: MXU matmul -------------
        y1 = jnp.dot(w1_ref[...], xt,
                     preferred_element_type=jnp.float32, precision=HI)
        y1 = jnp.maximum(y1 + b1_ref[...], 0.0)                    # (P, HW)

        # ---- (2) depthwise 3x3 (BN folded) + ReLU ---------------------------
        # Flat lane shift of da*W+db realigns neighbours; per-tap mask applies
        # the padding=1 / row-wrap semantics.  Pads are 128-lane aligned so the
        # concatenate places whole vreg tiles (no unaligned concat).
        zpad = jnp.zeros((P, padw), jnp.float32)
        ypad = jnp.concatenate([zpad, y1, zpad], axis=1)           # (P, HW+2*padw)
        acc = y1 * w2_ref[:, 4:5]                                  # center tap
        for t in (0, 1, 2, 3, 5, 6, 7, 8):
            da, db = t // 3 - 1, t % 3 - 1
            off = padw + da * W + db
            win = ypad[:, off:off + HW]                            # (P, HW)
            acc = acc + (win * m_ref[t:t + 1, :]) * w2_ref[:, t:t + 1]
        y2 = jnp.maximum(acc + b2_ref[...], 0.0)                   # (P, HW)

        if stride != 1:
            # Static stride-s spatial downsample as a 0/1 selection matmul.
            y2 = jnp.dot(y2, s_ref[...],
                         preferred_element_type=jnp.float32, precision=HI)  # (P, HWo)

        # ---- (3) project 1x1 conv (BN folded) + shortcut --------------------
        if shortcut == "conv":
            # Fused: [w3*s3 | ws*ss] @ [y2 ; x]  (single MXU pass, merged bias).
            y2 = jnp.concatenate([y2, xt], axis=0)                 # (P+Cin, HW)
        out = jnp.dot(w3_ref[...], y2,
                      preferred_element_type=jnp.float32, precision=HI)
        out = out + b3_ref[...]                                    # (Cout, HWo)
        if shortcut == "identity":
            out = out + xt
        o_ref[...] = out                                           # lane-dense store

    if stride != 1:
        def kernel(x_ref, w1_ref, b1_ref, w2_ref, b2_ref, m_ref,
                   w3_ref, b3_ref, s_ref, o_ref):
            compute(x_ref, w1_ref, b1_ref, w2_ref, b2_ref, m_ref,
                    w3_ref, b3_ref, s_ref, o_ref)
    else:
        def kernel(x_ref, w1_ref, b1_ref, w2_ref, b2_ref, m_ref,
                   w3_ref, b3_ref, o_ref):
            compute(x_ref, w1_ref, b1_ref, w2_ref, b2_ref, m_ref,
                    w3_ref, b3_ref, None, o_ref)
    return kernel


# ---------------------------------------------------------------------------
# Host-side constant tables (masks, stride-downsample selector)
# ---------------------------------------------------------------------------

def _depthwise_masks(H, W):
    """(9, H*W) 0/1 masks: tap (da,db) is valid at flat pixel k (padding=1)."""
    hw = H * W
    i = np.arange(hw) // W
    j = np.arange(hw) % W
    m = np.zeros((9, hw), np.float32)
    for t in range(9):
        da, db = t // 3 - 1, t % 3 - 1
        ok = (i + da >= 0) & (i + da < H) & (j + db >= 0) & (j + db < W)
        m[t] = ok.astype(np.float32)
    return jnp.asarray(m)


def _downsample_matrix(H, W, Ho, Wo, s):
    """(H*W, Ho*Wo) 0/1 selector: column (io,jo) picks flat pixel (io*s, jo*s)."""
    sel = np.zeros((H * W, Ho * Wo), np.float32)
    for io in range(Ho):
        for jo in range(Wo):
            sel[(io * s) * W + jo * s, io * Wo + jo] = 1.0
    return jnp.asarray(sel)


# ---------------------------------------------------------------------------
# Parameters (deterministic, synthetic) and block wrapper
# ---------------------------------------------------------------------------

def _fold_bn(gamma, beta, mean, var):
    scale = gamma / jnp.sqrt(var + EPS)
    bias = beta - mean * scale
    return scale, bias


def _make_bn_params(key, c):
    k1, k2, k3, k4 = jax.random.split(key, 4)
    gamma = jax.random.uniform(k1, (c,), jnp.float32, 0.5, 1.5)
    beta = jax.random.normal(k2, (c,), jnp.float32) * 0.1
    mean = jax.random.normal(k3, (c,), jnp.float32) * 0.1
    var = jax.random.uniform(k4, (c,), jnp.float32, 0.5, 1.5)
    return _fold_bn(gamma, beta, mean, var)


class BlockPallas:
    """JAX/Pallas equivalent of the PyTorch MobileNetV2 `Block` (fully fused)."""

    def __init__(self, in_planes, out_planes, expansion, stride, key):
        self.in_planes, self.out_planes, self.stride = in_planes, out_planes, stride
        planes = expansion * in_planes
        self.planes = planes
        keys = jax.random.split(key, 8)
        # conv1 (FilterStripe 1x1): torch weight (planes, in, 1, 1) -> (P, Cin)
        self.w1 = jax.random.normal(keys[0], (planes, in_planes), jnp.float32) * 0.2
        self.s1, self.b1 = _make_bn_params(keys[1], planes)
        # conv2 (Stripe_Group depthwise 3x3, mask==1): torch (planes,1,3,3) -> (P, 9)
        self.w2 = jax.random.normal(keys[2], (planes, 9), jnp.float32) * 0.2
        self.s2, self.b2 = _make_bn_params(keys[3], planes)
        # conv3 (FilterStripe 1x1): torch weight (out, planes, 1, 1) -> (Cout, P)
        self.w3 = jax.random.normal(keys[4], (out_planes, planes), jnp.float32) * 0.2
        self.s3, self.b3 = _make_bn_params(keys[5], out_planes)
        self.has_conv_shortcut = (stride == 1 and in_planes != out_planes)
        if self.has_conv_shortcut:
            self.ws = jax.random.normal(keys[6], (out_planes, in_planes), jnp.float32) * 0.2
            self.ss, self.bs = _make_bn_params(keys[7], out_planes)

        # ---- kernel-ready, BN-folded parameters (inference form) ------------
        self.w1k = self.w1 * self.s1[:, None]            # (P, Cin)
        self.b1k = self.b1[:, None]                      # (P, 1)
        self.w2k = self.w2 * self.s2[:, None]            # (P, 9)
        self.b2k = self.b2[:, None]                      # (P, 1)
        w3k = self.w3 * self.s3[:, None]                 # (Cout, P)
        if self.has_conv_shortcut:
            wsk = self.ws * self.ss[:, None]             # (Cout, Cin)
            self.w3k = jnp.concatenate([w3k, wsk], axis=1)   # (Cout, P+Cin)
            self.b3k = (self.b3 + self.bs)[:, None]
        else:
            self.w3k = w3k
            self.b3k = self.b3[:, None]

    def __call__(self, x_nchw):
        N, Cin, H, W = x_nchw.shape
        P, Cout, s = self.planes, self.out_planes, self.stride
        Ho = (H - 1) // s + 1          # == floor((H + 2 - 3)/s) + 1 for k=3, pad=1
        Wo = (W - 1) // s + 1
        HW, HWo = H * W, Ho * Wo

        if s != 1:
            shortcut = "none"
        elif self.has_conv_shortcut:
            shortcut = "conv"
        else:
            shortcut = "identity"

        # NCHW flattened to (N, C, H*W): no transpose, pixels land on the lane axis.
        x2 = x_nchw.reshape(N, Cin, HW).astype(jnp.float32)
        masks = _depthwise_masks(H, W)

        kernel = _make_block_kernel(H, W, Cin, P, Cout, s, Ho, Wo, shortcut)

        kproj = self.w3k.shape[1]
        args = [x2, self.w1k, self.b1k, self.w2k, self.b2k, masks,
                self.w3k, self.b3k]
        in_specs = [
            pl.BlockSpec((None, Cin, HW), lambda n: (n, 0, 0)),   # per-batch image
            pl.BlockSpec((P, Cin), lambda n: (0, 0)),             # weights pinned
            pl.BlockSpec((P, 1), lambda n: (0, 0)),
            pl.BlockSpec((P, 9), lambda n: (0, 0)),
            pl.BlockSpec((P, 1), lambda n: (0, 0)),
            pl.BlockSpec((9, HW), lambda n: (0, 0)),
            pl.BlockSpec((Cout, kproj), lambda n: (0, 0)),
            pl.BlockSpec((Cout, 1), lambda n: (0, 0)),
        ]
        if s != 1:
            args.append(_downsample_matrix(H, W, Ho, Wo, s))
            in_specs.append(pl.BlockSpec((HW, HWo), lambda n: (0, 0)))

        flops = N * (2 * Cin * P * HW            # expand matmul
                     + 18 * P * HW               # 3x3 depthwise (9 mul + 9 add)
                     + 2 * kproj * Cout * HWo    # project (+fused shortcut) matmul
                     + (2 * P * HW * HWo if s != 1 else 0))
        weight_elems = sum(int(a.size) for a in args[1:])
        bytes_accessed = 4 * (N * Cin * HW + N * Cout * HWo + weight_elems)

        out = pl.pallas_call(
            kernel,
            out_shape=jax.ShapeDtypeStruct((N, Cout, HWo), jnp.float32),
            grid=(N,),
            in_specs=in_specs,
            out_specs=pl.BlockSpec((None, Cout, HWo), lambda n: (n, 0, 0)),
            compiler_params=pltpu.CompilerParams(
                dimension_semantics=("parallel",)),
            cost_estimate=pl.CostEstimate(
                flops=int(flops), transcendentals=0,
                bytes_accessed=int(bytes_accessed)),
        )(*args)
        return out.reshape(N, Cout, Ho, Wo)      # free reshape, already NCHW


# ---------------------------------------------------------------------------
# Pure-JAX reference (lax conv, NCHW) for correctness checking
# ---------------------------------------------------------------------------

def reference_block(blk, x_nchw):
    dn = ('NCHW', 'OIHW', 'NCHW')
    hi = lax.Precision.HIGHEST
    P, st = blk.planes, blk.stride
    x = x_nchw.astype(jnp.float32)

    y = lax.conv_general_dilated(x, blk.w1[:, :, None, None], (1, 1), 'VALID',
                                 dimension_numbers=dn, precision=hi)
    y = jnp.maximum(y * blk.s1.reshape(1, -1, 1, 1) + blk.b1.reshape(1, -1, 1, 1), 0.0)

    y = lax.conv_general_dilated(y, blk.w2.reshape(P, 1, 3, 3), (st, st),
                                 ((1, 1), (1, 1)), dimension_numbers=dn,
                                 feature_group_count=P, precision=hi)
    y = jnp.maximum(y * blk.s2.reshape(1, -1, 1, 1) + blk.b2.reshape(1, -1, 1, 1), 0.0)

    y = lax.conv_general_dilated(y, blk.w3[:, :, None, None], (1, 1), 'VALID',
                                 dimension_numbers=dn, precision=hi)
    y = y * blk.s3.reshape(1, -1, 1, 1) + blk.b3.reshape(1, -1, 1, 1)

    if st == 1:
        if blk.has_conv_shortcut:
            sc = lax.conv_general_dilated(x, blk.ws[:, :, None, None], (1, 1), 'VALID',
                                          dimension_numbers=dn, precision=hi)
            sc = sc * blk.ss.reshape(1, -1, 1, 1) + blk.bs.reshape(1, -1, 1, 1)
        else:
            sc = x
        y = y + sc
    return y


if __name__ == "__main__":
    key = jax.random.PRNGKey(0)
    kx, kp1, kp2, kp3 = jax.random.split(key, 4)

    configs = [
        # (in_planes, out_planes, expansion, stride)
        (4, 8, 6, 1),   # stride=1, conv+BN shortcut (fused into project matmul)
        (4, 4, 6, 1),   # stride=1, identity shortcut
        (4, 8, 6, 2),   # stride=2, no shortcut
    ]
    for (in_p, out_p, exp, st), pk in zip(configs, (kp1, kp2, kp3)):
        x = jax.random.normal(kx, (2, in_p, 16, 16), jnp.float32)
        blk = BlockPallas(in_p, out_p, exp, st, pk)
        out = jax.block_until_ready(blk(x))
        ref = jax.block_until_ready(reference_block(blk, x))
        assert out.shape == ref.shape, (out.shape, ref.shape)
        if not jnp.allclose(out, ref, atol=1e-3, rtol=1e-3):
            err = float(jnp.max(jnp.abs(out - ref)))
            raise SystemExit(
                f"mismatch for config {(in_p, out_p, exp, st)}: max|diff|={err}")
    print("KERNEL_OK")
</pallas_src>

<mosaic_0001>
module attributes {stable_mosaic.version = 11 : i64} {
  func.func @kernel(%arg0: i32, %arg1: memref<1x4x256xf32, #tpu.memory_space<vmem>>, %arg2: memref<24x4xf32, #tpu.memory_space<vmem>>, %arg3: memref<24x1xf32, #tpu.memory_space<vmem>>, %arg4: memref<24x9xf32, #tpu.memory_space<vmem>>, %arg5: memref<24x1xf32, #tpu.memory_space<vmem>>, %arg6: memref<9x256xf32, #tpu.memory_space<vmem>>, %arg7: memref<8x28xf32, #tpu.memory_space<vmem>>, %arg8: memref<8x1xf32, #tpu.memory_space<vmem>>, %arg9: memref<1x8x256xf32, #tpu.memory_space<vmem>>) attributes {dimension_semantics = [#tpu.dimension_semantics<parallel>], iteration_bounds = array<i64: 2>, scalar_prefetch = 0 : i64, scratch_operands = 0 : i64, tpu.core_type = #tpu.core_type<tc>, window_params = [{transform_indices = @transform_0, window_bounds = array<i64: 1, 4, 256>}, {pipeline_mode = #tpu.pipeline_mode<synchronous>, transform_indices = @transform_1, window_bounds = array<i64: 24, 4>}, {pipeline_mode = #tpu.pipeline_mode<synchronous>, transform_indices = @transform_2, window_bounds = array<i64: 24, 1>}, {pipeline_mode = #tpu.pipeline_mode<synchronous>, transform_indices = @transform_3, window_bounds = array<i64: 24, 9>}, {pipeline_mode = #tpu.pipeline_mode<synchronous>, transform_indices = @transform_4, window_bounds = array<i64: 24, 1>}, {pipeline_mode = #tpu.pipeline_mode<synchronous>, transform_indices = @transform_5, window_bounds = array<i64: 9, 256>}, {pipeline_mode = #tpu.pipeline_mode<synchronous>, transform_indices = @transform_6, window_bounds = array<i64: 8, 28>}, {pipeline_mode = #tpu.pipeline_mode<synchronous>, transform_indices = @transform_7, window_bounds = array<i64: 8, 1>}, {transform_indices = @transform_8, window_bounds = array<i64: 1, 8, 256>}]} {
    %c0 = arith.constant 0 : index
    %c0_0 = arith.constant 0 : index
    %c0_1 = arith.constant 0 : index
    %0 = vector.load %arg1[%c0, %c0_0, %c0_1] : memref<1x4x256xf32, #tpu.memory_space<vmem>>, vector<1x4x256xf32>
    %1 = vector.shape_cast %0 : vector<1x4x256xf32> to vector<4x256xf32>
    %c0_2 = arith.constant 0 : index
    %c0_3 = arith.constant 0 : index
    %2 = vector.load %arg2[%c0_2, %c0_3] : memref<24x4xf32, #tpu.memory_space<vmem>>, vector<24x4xf32>
    %cst = arith.constant dense<0.000000e+00> : vector<24x256xf32>
    %3 = tpu.matmul %2, %1, %cst {dimension_numbers = #tpu.dot_dimension_numbers<[1], [0], [0], [1], [0, 0, 1, 1], [], []>, precision = #tpu.contract_precision<fp32>} : vector<24x4xf32>, vector<4x256xf32>, vector<24x256xf32> -> vector<24x256xf32>
    %c0_4 = arith.constant 0 : index
    %c0_5 = arith.constant 0 : index
    %4 = vector.load %arg3[%c0_4, %c0_5] : memref<24x1xf32, #tpu.memory_space<vmem>>, vector<24x1xf32>
    %5 = vector.broadcast %4 : vector<24x1xf32> to vector<24x256xf32>
    %6 = arith.addf %3, %5 : vector<24x256xf32>
    %cst_6 = arith.constant 0.000000e+00 : f32
    %7 = vector.broadcast %cst_6 : f32 to vector<24x256xf32>
    %8 = arith.maximumf %6, %7 : vector<24x256xf32>
    %cst_7 = arith.constant 0.000000e+00 : f32
    %9 = vector.broadcast %cst_7 : f32 to vector<24x128xf32>
    %10 = tpu.concatenate %9, %8, %9 in 1 : vector<24x128xf32>, vector<24x256xf32>, vector<24x128xf32> -> vector<24x512xf32>
    %c0_8 = arith.constant 0 : index
    %c4 = arith.constant 4 : index
    %11 = vector.load %arg4[%c0_8, %c4] : memref<24x9xf32, #tpu.memory_space<vmem>>, vector<24x1xf32>
    %12 = vector.broadcast %11 : vector<24x1xf32> to vector<24x256xf32>
    %13 = arith.mulf %8, %12 : vector<24x256xf32>
    %14 = vector.extract_strided_slice %10 {offsets = [0, 111], sizes = [24, 256], strides = [1, 1]} : vector<24x512xf32> to vector<24x256xf32>
    %c0_9 = arith.constant 0 : index
    %c0_10 = arith.constant 0 : index
    %15 = vector.load %arg6[%c0_9, %c0_10] : memref<9x256xf32, #tpu.memory_space<vmem>>, vector<1x256xf32>
    %16 = vector.broadcast %15 : vector<1x256xf32> to vector<24x256xf32>
    %17 = arith.mulf %14, %16 : vector<24x256xf32>
    %c0_11 = arith.constant 0 : index
    %c0_12 = arith.constant 0 : index
    %18 = vector.load %arg4[%c0_11, %c0_12] : memref<24x9xf32, #tpu.memory_space<vmem>>, vector<24x1xf32>
    %19 = vector.broadcast %18 : vector<24x1xf32> to vector<24x256xf32>
    %20 = arith.mulf %17, %19 : vector<24x256xf32>
    %21 = arith.addf %13, %20 : vector<24x256xf32>
    %22 = vector.extract_strided_slice %10 {offsets = [0, 112], sizes = [24, 256], strides = [1, 1]} : vector<24x512xf32> to vector<24x256xf32>
    %c1 = arith.constant 1 : index
    %c0_13 = arith.constant 0 : index
    %23 = vector.load %arg6[%c1, %c0_13] : memref<9x256xf32, #tpu.memory_space<vmem>>, vector<1x256xf32>
    %24 = vector.broadcast %23 : vector<1x256xf32> to vector<24x256xf32>
    %25 = arith.mulf %22, %24 : vector<24x256xf32>
    %c0_14 = arith.constant 0 : index
    %c1_15 = arith.constant 1 : index
    %26 = vector.load %arg4[%c0_14, %c1_15] : memref<24x9xf32, #tpu.memory_space<vmem>>, vector<24x1xf32>
    %27 = vector.broadcast %26 : vector<24x1xf32> to vector<24x256xf32>
    %28 = arith.mulf %25, %27 : vector<24x256xf32>
    %29 = arith.addf %21, %28 : vector<24x256xf32>
    %30 = vector.extract_strided_slice %10 {offsets = [0, 113], sizes = [24, 256], strides = [1, 1]} : vector<24x512xf32> to vector<24x256xf32>
    %c2 = arith.constant 2 : index
    %c0_16 = arith.constant 0 : index
    %31 = vector.load %arg6[%c2, %c0_16] : memref<9x256xf32, #tpu.memory_space<vmem>>, vector<1x256xf32>
    %32 = vector.broadcast %31 : vector<1x256xf32> to vector<24x256xf32>
    %33 = arith.mulf %30, %32 : vector<24x256xf32>
    %c0_17 = arith.constant 0 : index
    %c2_18 = arith.constant 2 : index
    %34 = vector.load %arg4[%c0_17, %c2_18] : memref<24x9xf32, #tpu.memory_space<vmem>>, vector<24x1xf32>
    %35 = vector.broadcast %34 : vector<24x1xf32> to vector<24x256xf32>
    %36 = arith.mulf %33, %35 : vector<24x256xf32>
    %37 = arith.addf %29, %36 : vector<24x256xf32>
    %38 = vector.extract_strided_slice %10 {offsets = [0, 127], sizes = [24, 256], strides = [1, 1]} : vector<24x512xf32> to vector<24x256xf32>
    %c3 = arith.constant 3 : index
    %c0_19 = arith.constant 0 : index
    %39 = vector.load %arg6[%c3, %c0_19] : memref<9x256xf32, #tpu.memory_space<vmem>>, vector<1x256xf32>
    %40 = vector.broadcast %39 : vector<1x256xf32> to vector<24x256xf32>
    %41 = arith.mulf %38, %40 : vector<24x256xf32>
    %c0_20 = arith.constant 0 : index
    %c3_21 = arith.constant 3 : index
    %42 = vector.load %arg4[%c0_20, %c3_21] : memref<24x9xf32, #tpu.memory_space<vmem>>, vector<24x1xf32>
    %43 = vector.broadcast %42 : vector<24x1xf32> to vector<24x256xf32>
    %44 = arith.mulf %41, %43 : vector<24x256xf32>
    %45 = arith.addf %37, %44 : vector<24x256xf32>
    %46 = vector.extract_strided_slice %10 {offsets = [0, 129], sizes = [24, 256], strides = [1, 1]} : vector<24x512xf32> to vector<24x256xf32>
    %c5 = arith.constant 5 : index
    %c0_22 = arith.constant 0 : index
    %47 = vector.load %arg6[%c5, %c0_22] : memref<9x256xf32, #tpu.memory_space<vmem>>, vector<1x256xf32>
    %48 = vector.broadcast %47 : vector<1x256xf32> to vector<24x256xf32>
    %49 = arith.mulf %46, %48 : vector<24x256xf32>
    %c0_23 = arith.constant 0 : index
    %c5_24 = arith.constant 5 : index
    %50 = vector.load %arg4[%c0_23, %c5_24] : memref<24x9xf32, #tpu.memory_space<vmem>>, vector<24x1xf32>
    %51 = vector.broadcast %50 : vector<24x1xf32> to vector<24x256xf32>
    %52 = arith.mulf %49, %51 : vector<24x256xf32>
    %53 = arith.addf %45, %52 : vector<24x256xf32>
    %54 = vector.extract_strided_slice %10 {offsets = [0, 143], sizes = [24, 256], strides = [1, 1]} : vector<24x512xf32> to vector<24x256xf32>
    %c6 = arith.constant 6 : index
    %c0_25 = arith.constant 0 : index
    %55 = vector.load %arg6[%c6, %c0_25] : memref<9x256xf32, #tpu.memory_space<vmem>>, vector<1x256xf32>
    %56 = vector.broadcast %55 : vector<1x256xf32> to vector<24x256xf32>
    %57 = arith.mulf %54, %56 : vector<24x256xf32>
    %c0_26 = arith.constant 0 : index
    %c6_27 = arith.constant 6 : index
    %58 = vector.load %arg4[%c0_26, %c6_27] : memref<24x9xf32, #tpu.memory_space<vmem>>, vector<24x1xf32>
    %59 = vector.broadcast %58 : vector<24x1xf32> to vector<24x256xf32>
    %60 = arith.mulf %57, %59 : vector<24x256xf32>
    %61 = arith.addf %53, %60 : vector<24x256xf32>
    %62 = vector.extract_strided_slice %10 {offsets = [0, 144], sizes = [24, 256], strides = [1, 1]} : vector<24x512xf32> to vector<24x256xf32>
    %c7 = arith.constant 7 : index
    %c0_28 = arith.constant 0 : index
    %63 = vector.load %arg6[%c7, %c0_28] : memref<9x256xf32, #tpu.memory_space<vmem>>, vector<1x256xf32>
    %64 = vector.broadcast %63 : vector<1x256xf32> to vector<24x256xf32>
    %65 = arith.mulf %62, %64 : vector<24x256xf32>
    %c0_29 = arith.constant 0 : index
    %c7_30 = arith.constant 7 : index
    %66 = vector.load %arg4[%c0_29, %c7_30] : memref<24x9xf32, #tpu.memory_space<vmem>>, vector<24x1xf32>
    %67 = vector.broadcast %66 : vector<24x1xf32> to vector<24x256xf32>
    %68 = arith.mulf %65, %67 : vector<24x256xf32>
    %69 = arith.addf %61, %68 : vector<24x256xf32>
    %70 = vector.extract_strided_slice %10 {offsets = [0, 145], sizes = [24, 256], strides = [1, 1]} : vector<24x512xf32> to vector<24x256xf32>
    %c8 = arith.constant 8 : index
    %c0_31 = arith.constant 0 : index
    %71 = vector.load %arg6[%c8, %c0_31] : memref<9x256xf32, #tpu.memory_space<vmem>>, vector<1x256xf32>
    %72 = vector.broadcast %71 : vector<1x256xf32> to vector<24x256xf32>
    %73 = arith.mulf %70, %72 : vector<24x256xf32>
    %c0_32 = arith.constant 0 : index
    %c8_33 = arith.constant 8 : index
    %74 = vector.load %arg4[%c0_32, %c8_33] : memref<24x9xf32, #tpu.memory_space<vmem>>, vector<24x1xf32>
    %75 = vector.broadcast %74 : vector<24x1xf32> to vector<24x256xf32>
    %76 = arith.mulf %73, %75 : vector<24x256xf32>
    %77 = arith.addf %69, %76 : vector<24x256xf32>
    %c0_34 = arith.constant 0 : index
    %c0_35 = arith.constant 0 : index
    %78 = vector.load %arg5[%c0_34, %c0_35] : memref<24x1xf32, #tpu.memory_space<vmem>>, vector<24x1xf32>
    %79 = vector.broadcast %78 : vector<24x1xf32> to vector<24x256xf32>
    %80 = arith.addf %77, %79 : vector<24x256xf32>
    %cst_36 = arith.constant 0.000000e+00 : f32
    %81 = vector.broadcast %cst_36 : f32 to vector<24x256xf32>
    %82 = arith.maximumf %80, %81 : vector<24x256xf32>
    %83 = tpu.concatenate %82, %1 in 0 : vector<24x256xf32>, vector<4x256xf32> -> vector<28x256xf32>
    %c0_37 = arith.constant 0 : index
    %c0_38 = arith.constant 0 : index
    %84 = vector.load %arg7[%c0_37, %c0_38] : memref<8x28xf32, #tpu.memory_space<vmem>>, vector<8x28xf32>
    %cst_39 = arith.constant dense<0.000000e+00> : vector<8x256xf32>
    %85 = tpu.matmul %84, %83, %cst_39 {dimension_numbers = #tpu.dot_dimension_numbers<[1], [0], [0], [1], [0, 0, 1, 1], [], []>, precision = #tpu.contract_precision<fp32>} : vector<8x28xf32>, vector<28x256xf32>, vector<8x256xf32> -> vector<8x256xf32>
    %c0_40 = arith.constant 0 : index
    %c0_41 = arith.constant 0 : index
    %86 = vector.load %arg8[%c0_40, %c0_41] : memref<8x1xf32, #tpu.memory_space<vmem>>, vector<8x1xf32>
    %87 = vector.broadcast %86 : vector<8x1xf32> to vector<8x256xf32>
    %88 = arith.addf %85, %87 : vector<8x256xf32>
    %c0_42 = arith.constant 0 : index
    %c0_43 = arith.constant 0 : index
    %c0_44 = arith.constant 0 : index
    %89 = vector.load %arg9[%c0_42, %c0_43, %c0_44] : memref<1x8x256xf32, #tpu.memory_space<vmem>>, vector<1x8x256xf32>
    %90 = vector.shape_cast %89 : vector<1x8x256xf32> to vector<8x256xf32>
    %91 = vector.shape_cast %88 : vector<8x256xf32> to vector<1x8x256xf32>
    tpu.vector_store %arg9[%c0_42, %c0_43, %c0_44], %91 {strides = array<i32>} : memref<1x8x256xf32, #tpu.memory_space<vmem>>, vector<1x8x256xf32>,
    return
  }
  func.func @transform_0(%arg0: i32) -> (i32, i32, i32) {
    %c0_i32 = arith.constant 0 : i32
    %c0_i32_0 = arith.constant 0 : i32
    %c0_i32_1 = arith.constant 0 : i32
    return %arg0, %c0_i32, %c0_i32_0 : i32, i32, i32
  }
  func.func @transform_1(%arg0: i32) -> (i32, i32) {
    %c0_i32 = arith.constant 0 : i32
    %c0_i32_0 = arith.constant 0 : i32
    %c0_i32_1 = arith.constant 0 : i32
    return %c0_i32, %c0_i32_0 : i32, i32
  }
  func.func @transform_2(%arg0: i32) -> (i32, i32) {
    %c0_i32 = arith.constant 0 : i32
    %c0_i32_0 = arith.constant 0 : i32
    %c0_i32_1 = arith.constant 0 : i32
    return %c0_i32, %c0_i32_0 : i32, i32
  }
  func.func @transform_3(%arg0: i32) -> (i32, i32) {
    %c0_i32 = arith.constant 0 : i32
    %c0_i32_0 = arith.constant 0 : i32
    %c0_i32_1 = arith.constant 0 : i32
    return %c0_i32, %c0_i32_0 : i32, i32
  }
  func.func @transform_4(%arg0: i32) -> (i32, i32) {
    %c0_i32 = arith.constant 0 : i32
    %c0_i32_0 = arith.constant 0 : i32
    %c0_i32_1 = arith.constant 0 : i32
    return %c0_i32, %c0_i32_0 : i32, i32
  }
  func.func @transform_5(%arg0: i32) -> (i32, i32) {
    %c0_i32 = arith.constant 0 : i32
    %c0_i32_0 = arith.constant 0 : i32
    %c0_i32_1 = arith.constant 0 : i32
    return %c0_i32, %c0_i32_0 : i32, i32
  }
  func.func @transform_6(%arg0: i32) -> (i32, i32) {
    %c0_i32 = arith.constant 0 : i32
    %c0_i32_0 = arith.constant 0 : i32
    %c0_i32_1 = arith.constant 0 : i32
    return %c0_i32, %c0_i32_0 : i32, i32
  }
  func.func @transform_7(%arg0: i32) -> (i32, i32) {
    %c0_i32 = arith.constant 0 : i32
    %c0_i32_0 = arith.constant 0 : i32
    %c0_i32_1 = arith.constant 0 : i32
    return %c0_i32, %c0_i32_0 : i32, i32
  }
  func.func @transform_8(%arg0: i32) -> (i32, i32, i32) {
    %c0_i32 = arith.constant 0 : i32
    %c0_i32_0 = arith.constant 0 : i32
    %c0_i32_1 = arith.constant 0 : i32
    return %arg0, %c0_i32, %c0_i32_0 : i32, i32, i32
  }
}

</mosaic_0001>

<bundles_post_ra>
// kernel: tpu_custom_call.1
= control target key start
LH: loop header
LB: loop body
LE: loop exit
PB: predicated region body
PF: predicated region fallthrough
CT: control target
= control target key end

     0   :  { %13 = vsyncpa [#allocation3], 0  ;;  %s3635_s0 = inlined_call_operand.vmem [shape: f32[2,4,256], index: 0, kind: input, shape index: {}]   ;;  %s3636_s1 = inlined_call_operand.vmem [shape: f32[24,4], index: 1, kind: input, shape index: {}]   ;;  %s3637_s2 = inlined_call_operand.vmem [shape: f32[24,1], index: 2, kind: input, shape index: {}]   ;;  %s3638_s3 = inlined_call_operand.vmem [shape: f32[24,9], index: 3, kind: input, shape index: {}]   ;;  %s3639_s4 = inlined_call_operand.vmem [shape: f32[24,1], index: 4, kind: input, shape index: {}]   ;;  %s3640_s5 = inlined_call_operand.vmem [shape: f32[9,256], index: 5, kind: input, shape index: {}]   ;;  %s3641_s6 = inlined_call_operand.vmem [shape: f32[8,28], index: 6, kind: input, shape index: {}]   ;;  %s3642_s7 = inlined_call_operand.vmem [shape: f32[8,1], index: 7, kind: input, shape index: {}]   ;;  %s3643_s8 = inlined_call_operand.hbm [shape: f32[2,8,256], index: 8, kind: output, shape index: {}]  }
   0x1   :  { %15 = vsyncpa [#allocation3 + $0x1], 0  ;;  %s2661_s27 = smov 0   ;;  %s2663_s28 = smov 0  }
   0x2   :  { %s2665_s29 = smov 0   ;;  %s2667_s30 = smov 0  }
   0x3 LB: > { %s2682_s9 = sadd.s32 4294967295, %s2595_s30   ;;  %s2339_s10 = sadd.s32 4294967294, %s2595_s30   ;;  %s2595_s30 = sphi %s2667_s30, %s3681_s30   ;;  %s2591_s29 = sphi %s2665_s29, %s3680_s29   ;;  %s2587_s28 = sphi %s2663_s28, %s3679_s28   ;;  %s2583_s27 = sphi %s2661_s27, %s3678_s27  }
   0x4   : > { %s2686_s11 = sadd.s32 1, %s2595_s30   ;;  %s201_s12 = sadd.s32 1, %s2591_s29 }
   0x5   : > { %s198_s13 = ssub.s32 %s2595_s30, %s2686_s11  ;;  %p211_p0 = scmp.ne.s32.totalorder %s2591_s29, %s2587_s28 }
   0x6   : > { %p199_p1 = scmp.eq.s32.totalorder %s198_s13, 0  ;;  %p212_p2 = scmp.eq.s32.totalorder %s2682_s9, 1 }
   0x7   : > { %p217_p3 = scmp.ne.s32.totalorder %s2587_s28, %s2583_s27  ;;  %p218_p4 = scmp.eq.s32.totalorder %s2339_s10, 1 }
   0x8   : > { %s2697_s14 = scalar_select %p199_p1, %s2591_s29, %s201_s12  }
   0x9   : > { %p2699_p5 = por %p212_p2, %p211_p0  ;;  %p2703_p6 = por %p218_p4, %p217_p3 }
   0xa   : > { %p2342_p7 = scmp.ge.s32.totalorder %s2595_s30, 1  ;;  %p265_p8 = scmp.lt.s32.totalorder %s2595_s30, 3 }
   0xc   : > { %p266_p9 = pnand %p2342_p7, %p265_p8 }
   0xe   : > { %269 = sbr.rel (%p266_p9) target bundleno = 809 (0x329), region = 52 }
  0x15   : > { %v310_v0 = vld [vmem:[%s3637_s2 + $0x10] sm:$0xff]  ;;  %v2715_v1 = vld [vmem:[%s3638_s3 + $0x8] sm:$0xff]  ;;  %v938_v2 = vlaneseq  ;;  %v2597_v3 = vmov 0   ;;  %v2598_v4 = vmov 1   ;;  %p299_p10 = scmp.lt.s32.totalorder %s2682_s9, 1  ;;  %v2723_v5 = vld [vmem:[%s3638_s3] sm:$0xff] }
  0x16   : > { %2513 = vset.pattern.permute.xlu1 %v2597_v3  ;;  %2515 = vset.pattern.permute.xlu0 %v2598_v4  ;;  %v305_v7 = vld [vmem:[%s3636_s1] sm:$0xff]  ;;  %vm328_vm0 = vcmask 31744   ;;  %v3644_v9 = vmov 0.0   ;;  %v306_v11 = vld [vmem:[%s3636_s1 + $0x8] sm:$0xff]  ;;  %vm338_vm1 = vcmask 1043456   ;;  %v307_v16 = vld [vmem:[%s3636_s1 + $0x10] sm:$0xff] }
  0x17   : > { %323 = vperm.xlu1 %2513, %v310_v0   ;;  %1061 = vperm.xlu0 %2515, %v2715_v1   ;;  %v939_v6 = vshrl.u32 %v938_v2, 7  ;;  %v2731_v8 = vld [vmem:[%s3640_s5 + $0x1] ss:$8 sm:$0x3]  ;;  %s300_s10 = scalar_select %p299_p10, %s2682_s9, 1  ;;  %v330_v10 = vsel %vm328_vm0, %v305_v7, 0 }
  0x18   : > { %409 = vmatprep.mubr.f32.mxu1 %v3644_v9  ;;  %517 = vmatprep.mubr.f32.mxu0 %v3644_v9  ;;  %v2742_v13 = vand.u32 4294901760, %v330_v10  ;;  %v333_v14 = vsel %vm328_vm0, %v306_v11, 0  ;;  %v336_v21 = vsel %vm328_vm0, %v307_v16, 0  ;;  %s2600_s23 = smov 112   ;;  %v2774_v27 = vld [vmem:[%s3638_s3 + $0x10] sm:$0xff]  ;;  %s2602_s18 = smov 113  }
  0x19   : > { %v2740_v12 = vsub.s32 0, %v939_v6  ;;  %s2358_s17 = sshll.u32 %s300_s10, 3  ;;  %v2745_v15 = vand.u32 4294901760, %v333_v14  ;;  %v936_v25 = vld [vmem:[%s3640_s5] ss:$8 sm:$0x3] }
  0x1a   : > { %s303_s22 = scalar_lea.vmem %s3635_s0, %s2358_s17  ;;  %v2757_v18 = vsub.f32 %v330_v10, %v2742_v13  ;;  %v2769_v26 = vand.u32 4294901760, %v336_v21  ;;  %v2781_v29 = vld [vmem:[%s3640_s5 + $0x2] ss:$8 sm:$0x3]  ;;  %v2788_v33 = vsub.s32 1, %v939_v6  ;;  %s2601_s17 = smov 111  }
  0x1b   : > { %963 = vperm.xlu1 %2513, %v2723_v5   ;;  %v1035_v17 = vrot.slane %v2731_v8, %v2740_v12  ;;  %v304_v19 = vld [vmem:[%s303_s22] sm:$0xff]  ;;  %v2760_v20 = vsub.f32 %v333_v14, %v2745_v15  ;;  %v941_v36 = vrot.slane %v936_v25, %v2740_v12  ;;  %v1129_v40 = vrot.slane %v2781_v29, %v2740_v12  ;;  %s2604_s21 = smov 127   ;;  %s2606_s25 = smov 1   ;;  %v309_v16 = vld [vmem:[%s3637_s2 + $0x8] sm:$0xff] }
  0x1c   : > { %v327_v22 = vcombine.high %v304_v19, %v304_v19  ;;  %v339_v23 = vsel %vm338_vm1, %v304_v19, 0  ;;  %v412_v24 = vand.u32 4294901760, %v2757_v18  ;;  %v2791_v34 = vsub.f32 %v336_v21, %v2769_v26  ;;  %v2832_v51 = vld [vmem:[%s3640_s5 + $0x3] ss:$8 sm:$0x3]  ;;  %s2608_s12 = smov 15  }
  0x1d   : > { %1040 = vrot.lane.b32.xlu0 %v1035_v17, %s2600_s23  ;;  %v2776_v28 = vand.u32 4294901760, %v339_v23  ;;  %v423_v30 = vand.u32 4294901760, %v2760_v20  ;;  %v945_v44 = vrot.slane %v936_v25, %v2788_v33  ;;  %v2603_v49 = vmov 2   ;;  %v2853_v56 = vld [vmem:[%s3640_s5 + $0x5] ss:$8 sm:$0x3] }
  0x1e   : > { %v341_v31 = vsel %vm338_vm1, %v327_v22, 0  ;;  %v413_v32 = vsub.f32 %v2757_v18, %v412_v24  ;;  %v434_v41 = vand.u32 4294901760, %v2791_v34  ;;  %v1223_v55 = vrot.slane %v2832_v51, %v2740_v12  ;;  %v2873_v60 = vld [vmem:[%s3640_s5 + $0x6] ss:$8 sm:$0x3]  ;;  %s2610_s20 = smov 16  }
  0x1f   : > { %3657 = vst [vmem:[#allocation5_spill] sm:$0xff] %v2776_v28  ;;  %2514 = vset.pattern.permute.xlu1 %v2598_v4  ;;  %v2794_v35 = vand.u32 4294901760, %v341_v31  ;;  %v424_v37 = vsub.f32 %v2760_v20, %v423_v30  ;;  %v2801_v38 = vsub.f32 %v339_v23, %v2776_v28  ;;  %v2605_v57 = vmov 3   ;;  %v2892_v2 = vld [vmem:[%s3640_s5 + $0x7] ss:$8 sm:$0x3] }
  0x20   : > { %1057 = vperm.xlu1 %2514, %v2723_v5   ;;  %v414_v39 = vand.u32 4294901760, %v413_v32  ;;  %v435_v48 = vsub.f32 %v2791_v34, %v434_v41  ;;  %v1039_v58 = vrot.slane %v2731_v8, %v2788_v33  ;;  %v1317_v59 = vrot.slane %v2853_v56, %v2740_v12  ;;  %v308_v14 = vld [vmem:[%s3637_s2] sm:$0xff]  ;;  %s2614_s22 = smov 17  }
  0x21   : > { %3658 = vst [vmem:[#allocation6_spill] sm:$0xff] %v2794_v35  ;;  %3659 = vst [vmem:[#allocation7_spill] sm:$0xff] %v2801_v38  ;;  %1065 = vperm.xlu0 %2515, %v2774_v27   ;;  %344 = vmatprep.subr.mxu1 %v2794_v35  ;;  %v2809_v42 = vsub.f32 %v341_v31, %v2794_v35  ;;  %v2812_v43 = vand.u32 4294901760, %v2801_v38  ;;  %v425_v45 = vand.u32 4294901760, %v424_v37  ;;  %v2607_v61 = vmov 5  }
  0x22   : > { %346 = vmatpush1.msra.mxu1 %v2776_v28  ;;  %v436_v54 = vand.u32 4294901760, %v435_v48  ;;  %v1409_v62 = vrot.slane %v2873_v60, %v2740_v12  ;;  %v1133_v63 = vrot.slane %v2781_v29, %v2788_v33  ;;  %v2609_v0 = vmov 6  }
  0x23   : > { %3660 = vst [vmem:[#allocation8_spill] sm:$0xff] %v2809_v42  ;;  %3661 = vst [vmem:[#allocation9_spill] sm:$0xff] %v2812_v43  ;;  %415 = vmatmul.mubr.f32.vlgmr.msra.gmra.mrb[0].mxu1 %v414_v39  ;;  %v2818_v46 = vand.u32 4294901760, %v2809_v42  ;;  %v452_v47 = vsub.f32 %v2801_v38, %v2812_v43  ;;  %v1501_v4 = vrot.slane %v2892_v2, %v2740_v12  ;;  %v2611_v6 = vmov 7  }
  0x24   : > { %946 = vrot.lane.b32.xlu1 %v941_v36, %s2601_s17  ;;  %420 = vmatprep.mubr.f32.mxu1 %v3644_v9  ;;  %v1227_v7 = vrot.slane %v2832_v51, %v2788_v33  ;;  %v2612_v8 = vmov 8   ;;  %v2613_v10 = vmov 4   ;;  %v1321_v11 = vrot.slane %v2853_v56, %v2788_v33 }
  0x25   : > { %3662 = vst [vmem:[#allocation10_spill] sm:$0xff] %v2818_v46  ;;  %1134 = vrot.lane.b32.xlu0 %v1129_v40, %s2602_s18  ;;  %v446_v50 = vsub.f32 %v2809_v42, %v2818_v46  ;;  %2516 = vset.pattern.permute.xlu1 %v2603_v49  ;;  %v2834_v52 = vand.u32 4294901760, %v452_v47  ;;  %v1413_v17 = vrot.slane %v2873_v60, %v2788_v33  ;;  %vm950_vm2 = vcmask 908288  }
  0x26   : > { %2518 = vset.pattern.permute.xlu0 %v2603_v49  ;;  %vm1044_vm3 = vcmask 916480   ;;  %vm1138_vm4 = vcmask 924672   ;;  %vm1232_vm5 = vcmask 1039360   ;;  %vm1198_vm6 = vcmask 121856  }
  0x27   : > { %3663 = vst [vmem:[#allocation11_spill] sm:$0xff] %v2834_v52  ;;  %426 = vmatmul.mubr.f32.gmra.mrb[2].mxu1 %v425_v45  ;;  %v2837_v53 = vand.u32 4294901760, %v446_v50  ;;  %vm1010_vm7 = vcmask 138240   ;;  %vm1104_vm8 = vcmask 130048   ;;  %vm1292_vm9 = vcmask 7168  }
  0x28   : > { %948 = vrot.lane.b32.xlu1 %v945_v44, %s2601_s17  ;;  %431 = vmatprep.mubr.f32.mxu1 %v3644_v9  ;;  %vm1716_vm10 = vcmask 228352  }
  0x29   : > { %3664 = vst [vmem:[#allocation12_spill] sm:$0xff] %v2837_v53  ;;  %1159 = vperm.xlu0 %2518, %v2774_v27   ;;  %448 = vmatprep.subr.mxu0 %v2837_v53 }
  0x2a   : > { %454 = vmatpush1.msra.mxu0 %v2834_v52 }
  0x2b   : > { %437 = vmatmul.mubr.f32.gmra.mrb[4].mxu1 %v436_v54  ;;  %519 = vmatmul.mubr.f32.vlgmr.msra.gmra.mrb[0].mxu0 %v2742_v13 }
  0x2c   : > { %1151 = vperm.xlu1 %2516, %v2723_v5   ;;  %541 = vmatprep.subr.mxu0 %v2809_v42 }
  0x2d   : > { %1228 = vrot.lane.b32.xlu0 %v1223_v55, %s2604_s21  ;;  %524 = vmatprep.mubr.f32.mxu0 %v3644_v9 }
  0x2e   : > { %544 = vmatpush1.msra.mxu0 %v2801_v38  ;;  %2520 = vset.pattern.permute.xlu0 %v2605_v57 }
  0x2f   : > { %526 = vmatmul.mubr.f32.gmra.mrb[2].mxu0 %v2745_v15  ;;  %633 = vmatprep.subr.mxu0 %v2794_v35 }
  0x30   : > { %1155 = vperm.xlu1 %2516, %v2715_v1   ;;  %531 = vmatprep.mubr.f32.mxu0 %v3644_v9 }
  0x31   : > { %1253 = vperm.xlu0 %2520, %v2774_v27   ;;  %1792 = vmatprep.mubr.f32.mxu1 %v3644_v9 }
  0x33   : > { %533 = vmatmul.mubr.f32.gmra.mrb[4].mxu0 %v2769_v26 }
  0x34   : > { %1042 = vrot.lane.b32.xlu1 %v1039_v58, %s2600_s23  ;;  %607 = vmatprep.mubr.f32.mxu0 %v3644_v9 }
  0x35   : > { %1322 = vrot.lane.b32.xlu0 %v1317_v59, %s2606_s25  ;;  %2517 = vset.pattern.permute.xlu1 %v2605_v57 }
  0x36   : > { %2522 = vset.pattern.permute.xlu0 %v2607_v61 }
  0x37   : > { %610 = vmatmul.mubr.f32.vlgmr.msra.gmra.mrb[0].mxu0 %v2757_v18 }
  0x38   : > { %1245 = vperm.xlu1 %2517, %v2723_v5   ;;  %615 = vmatprep.mubr.f32.mxu0 %v3644_v9 }
  0x39   : > { %1346 = vperm.xlu0 %2522, %v2774_v27   ;;  %635 = vmatpush1.msra.mxu0 %v2776_v28 }
  0x3a   : > { %729 = vmatprep.subr.mxu0 %v2818_v46 }
  0x3b   : > { %618 = vmatmul.mubr.f32.gmra.mrb[2].mxu0 %v2760_v20 }
  0x3c   : > { %1249 = vperm.xlu1 %2517, %v2715_v1   ;;  %623 = vmatprep.mubr.f32.mxu0 %v3644_v9 }
  0x3d   : > { %1414 = vrot.lane.b32.xlu0 %v1409_v62, %s2608_s12 }
  0x3e   : > { %2524 = vset.pattern.permute.xlu0 %v2609_v0 }
  0x3f   : > { %626 = vmatmul.mubr.f32.gmra.mrb[4].mxu0 %v2791_v34 }
  0x40   : > { %1136 = vrot.lane.b32.xlu1 %v1133_v63, %s2602_s18  ;;  %698 = vmatprep.mubr.f32.mxu0 %v3644_v9 }
  0x41   : > { %1438 = vperm.xlu0 %2524, %v2774_v27   ;;  %2519 = vset.pattern.permute.xlu1 %v2607_v61 }
  0x43   : > { %702 = vmatmul.mubr.f32.vlgmr.msra.gmra.mrb[0].mxu0 %v412_v24 }
  0x44   : > { %1338 = vperm.xlu1 %2519, %v2723_v5   ;;  %707 = vmatprep.mubr.f32.mxu0 %v3644_v9 }
  0x45   : > { %1506 = vrot.lane.b32.xlu0 %v1501_v4, %s2610_s20  ;;  %733 = vmatpush1.msra.mxu0 %v2812_v43 }
  0x46   : > { %2526 = vset.pattern.permute.xlu0 %v2611_v6  ;;  %819 = vmatprep.subr.mxu0 %v2794_v35 }
  0x47   : > { %711 = vmatmul.mubr.f32.gmra.mrb[2].mxu0 %v423_v30 }
  0x48   : > { %1342 = vperm.xlu1 %2519, %v2715_v1   ;;  %716 = vmatprep.mubr.f32.mxu0 %v3644_v9 }
  0x49   : > { %1530 = vperm.xlu0 %2526, %v2774_v27  }
  0x4b   : > { %720 = vmatmul.mubr.f32.gmra.mrb[4].mxu0 %v434_v41 }
  0x4c   : > { %1230 = vrot.lane.b32.xlu1 %v1227_v7, %s2604_s21  ;;  %796 = vmatprep.mubr.f32.mxu0 %v3644_v9 }
  0x4d   : > { %2527 = vset.pattern.permute.xlu0 %v2612_v8  ;;  %2521 = vset.pattern.permute.xlu1 %v2609_v0 }
  0x4e   : > { %1622 = vperm.xlu0 %2527, %v2774_v27  }
  0x4f   : > { %798 = vmatmul.mubr.f32.vlgmr.msra.gmra.mrb[0].mxu0 %v2742_v13 }
  0x50   : > { %1430 = vperm.xlu1 %2521, %v2723_v5   ;;  %803 = vmatprep.mubr.f32.mxu0 %v3644_v9 }
  0x51   : > { %821 = vmatpush1.msra.mxu0 %v2776_v28 }
  0x52   : > { %2529 = vset.pattern.permute.xlu0 %v2613_v10 }
  0x53   : > { %927 = vperm.xlu0 %2529, %v2774_v27   ;;  %805 = vmatmul.mubr.f32.gmra.mrb[2].mxu0 %v2745_v15 }
  0x54   : > { %1434 = vperm.xlu1 %2521, %v2715_v1   ;;  %810 = vmatprep.mubr.f32.mxu0 %v3644_v9 }
  0x57   : > { %2530 = vset.pattern.permute.xlu0 %v2597_v3  ;;  %812 = vmatmul.mubr.f32.gmra.mrb[4].mxu0 %v2769_v26 }
  0x58   : > { %313 = vperm.xlu0 %2530, %v308_v14   ;;  %1324 = vrot.lane.b32.xlu1 %v1321_v11, %s2606_s25 }
  0x59   : > { %884 = vmatprep.mubr.f32.mxu0 %v3644_v9  ;;  %2523 = vset.pattern.permute.xlu1 %v2611_v6 }
  0x5b   : > { %886 = vmatmul.mubr.f32.vlgmr.msra.gmra.mrb[0].mxu0 %v2742_v13  ;;  %v1505_v13 = vrot.slane %v2892_v2, %v2788_v33 }
  0x5c   : > { %318 = vperm.xlu0 %2530, %v309_v16   ;;  %1522 = vperm.xlu1 %2523, %v2723_v5  }
  0x5d   : > { %891 = vmatprep.mubr.f32.mxu0 %v3644_v9 }
  0x5f   : > { %893 = vmatmul.mubr.f32.gmra.mrb[2].mxu0 %v2745_v15  ;;  %v2352_v15 = vld [vmem:[%s3640_s5 + $0x10] ss:$8 sm:$0x3] }
  0x60   : > { %967 = vperm.xlu0 %2530, %v2715_v1   ;;  %1526 = vperm.xlu1 %2523, %v2715_v1   ;;  %v1593_v18 = vrot.slane %v2352_v15, %v2740_v12  ;;  %v1597_v19 = vrot.slane %v2352_v15, %v2788_v33 }
  0x61   : > { %898 = vmatprep.mubr.f32.mxu0 %v3644_v9 }
  0x63   : > { %900 = vmatmul.mubr.f32.gmra.mrb[4].mxu0 %v2769_v26 }
  0x64   : > { %971 = vperm.xlu0 %2530, %v2774_v27   ;;  %1416 = vrot.lane.b32.xlu1 %v1413_v17, %s2608_s12 }
  0x65   : > { %2525 = vset.pattern.permute.xlu1 %v2612_v8 }
  0x68   : > { %1614 = vperm.xlu1 %2525, %v2723_v5  }
  0x6c   : > { %1618 = vperm.xlu1 %2525, %v2715_v1  }
  0x70   : > { %1508 = vrot.lane.b32.xlu1 %v1505_v13, %s2610_s20 }
  0x71   : > { %2528 = vset.pattern.permute.xlu1 %v2613_v10 }
  0x74   : > { %1598 = vrot.lane.b32.xlu1 %v1593_v18, %s2614_s22 }
  0x78   : > { %1600 = vrot.lane.b32.xlu1 %v1597_v19, %s2614_s22 }
  0x7c   : > { %917 = vperm.xlu1 %2528, %v2723_v5  }
  0x80   : > { %922 = vperm.xlu1 %2528, %v2715_v1  }
  0x84   : > { %2531 = vset.pattern.permute.xlu1 %v2597_v3 }
  0x96   : > { %v2966_v20 = vpop.permute.xlu1 %323  ;;  %v2968_v21 = vpop.permute.xlu0 %1061 }
  0x9a   : > { %v2970_v22 = vpop.permute.xlu1 %963  ;;  %v2972_v12 = vpop.permute.xlu0 %1040 }
  0x9b   : > { %v1049_v1 = vmul.f32 0.0, %v2972_v12 }
  0x9d   : > { %v1071_v10 = vmul.f32 %v2968_v21, %v1049_v1 }
  0x9f   : > { %v2974_v23 = vpop.permute.xlu1 %1057 }
  0xa0   : > { %v2976_v24 = vpop.permute.xlu0 %1065  ;;  %v1068_v30 = vmul.f32 %v2974_v23, %v1049_v1 }
  0xa1   : > { %v1074_v13 = vmul.f32 %v2976_v24, %v1049_v1 }
  0xa3   : > { %v2978_v25 = vpop.permute.xlu1 %946 }
  0xa4   : > { %v955_v5 = vmul.f32 0.0, %v2978_v25  ;;  %v2981_v26 = vpop.permute.xlu0 %1134 }
  0xa5   : > { %v1143_v6 = vmul.f32 0.0, %v2981_v26 }
  0xa6   : > { %v974_v3 = vmul.f32 %v2970_v22, %v955_v5 }
  0xa7   : > { %v2985_v27 = vpop.permute.xlu1 %948 }
  0xa8   : > { %992 = vrot.lane.b32.xlu0 %v974_v3, %s2614_s22  ;;  %v2988_v29 = vpop.permute.xlu0 %1159  ;;  %v3120_v42 = vsel %vm950_vm2, %v2978_v25, %v2985_v27 }
  0xa9   : > { %v1168_v3 = vmul.f32 %v2988_v29, %v1143_v6 }
  0xab   : > { %v2991_v31 = vpop.permute.xlu1 %1151 }
  0xac   : > { %1086 = vrot.lane.b32.xlu0 %v1068_v30, %s2610_s20  ;;  %v2994_v32 = vpop.permute.xlu0 %1228  ;;  %v1162_v11 = vmul.f32 %v2991_v31, %v1143_v6 }
  0xad   : > { %v1237_v17 = vmul.f32 0.0, %v2994_v32 }
  0xaf   : > { %v2996_v33 = vpop.permute.xlu1 %1155 }
  0xb0   : > { %v2998_v34 = vpop.permute.xlu0 %1253  ;;  %v1165_v14 = vmul.f32 %v2996_v33, %v1143_v6 }
  0xb3   : > { %v3000_v36 = vpop.permute.xlu1 %1042 }
  0xb4   : > { %v3002_v37 = vpop.permute.xlu0 %1322 }
  0xb7   : > { %v3004_v39 = vpop.permute.xlu1 %1245 }
  0xb8   : > { %v3006_v40 = vpop.permute.xlu0 %1346  ;;  %v1256_v15 = vmul.f32 %v3004_v39, %v1237_v17 }
  0xbb   : > { %v3008_v41 = vpop.permute.xlu1 %1249 }
  0xbc   : > { %v3010_v44 = vpop.permute.xlu0 %1414 }
  0xbf   : > { %v3012_v45 = vpop.permute.xlu1 %1136 }
  0xc0   : > { %v3014_v47 = vpop.permute.xlu0 %1438 }
  0xc3   : > { %v3016_v48 = vpop.permute.xlu1 %1338 }
  0xc4   : > { %v3018_v49 = vpop.permute.xlu0 %1506 }
  0xc7   : > { %v3020_v50 = vpop.permute.xlu1 %1342 }
  0xc8   : > { %v3022_v51 = vpop.permute.xlu0 %1530 }
  0xcb   : > { %v3024_v54 = vpop.permute.xlu1 %1230 }
  0xcd   : > { %v3026_v55 = vpop.permute.xlu0 %1622 }
  0xcf   : > { %v3028_v56 = vpop.permute.xlu1 %1430 }
  0xd2   : > { %v3030_v57 = vpop.permute.xlu0 %927 }
  0xd3   : > { %3665 = vst [vmem:[#allocation13_spill] sm:$0xff] %v3030_v57  ;;  %v3032_v58 = vpop.permute.xlu1 %1434 }
  0xd7   : > { %v314_v59 = vpop.permute.xlu0 %313  ;;  %v3034_v60 = vpop.permute.xlu1 %1324 }
  0xd8   : > { %v1332_v30 = vmul.f32 0.0, %v3034_v60 }
  0xda   : > { %v1357_v46 = vmul.f32 %v3006_v40, %v1332_v30 }
  0xdb   : > { %v319_v61 = vpop.permute.xlu0 %318  ;;  %v3036_v62 = vpop.permute.xlu1 %1522 }
  0xdf   : > { %v3038_v63 = vpop.permute.xlu0 %967  ;;  %v3040_v0 = vpop.permute.xlu1 %1526 }
  0xe0   : > { %v977_v2 = vmul.f32 %v3038_v63, %v955_v5 }
  0xe2   : > { %998 = vrot.lane.b32.xlu1 %v977_v2, %s2614_s22  ;;  %v1351_v2 = vmul.f32 %v3016_v48, %v1332_v30 }
  0xe3   : > { %v3044_v4 = vpop.permute.xlu0 %971  ;;  %v3047_v7 = vpop.permute.xlu1 %1416 }
  0xe4   : > { %v980_v8 = vmul.f32 %v3044_v4, %v955_v5  ;;  %v1424_v19 = vmul.f32 0.0, %v3047_v7  ;;  %v1259_v5 = vmul.f32 %v3008_v41, %v1237_v17 }
  0xe6   : > { %1092 = vrot.lane.b32.xlu1 %v1071_v10, %s2610_s20  ;;  %1004 = vrot.lane.b32.xlu0 %v980_v8, %s2614_s22  ;;  %v1443_v1 = vmul.f32 %v3028_v56, %v1424_v19  ;;  %v1446_v10 = vmul.f32 %v3032_v58, %v1424_v19 }
  0xe7   : > { %v3055_v16 = vpop.permute.xlu1 %1614 }
  0xea   : > { %1180 = vrot.lane.b32.xlu1 %v1162_v11, %s2608_s12  ;;  %1186 = vrot.lane.b32.xlu0 %v1165_v14, %s2608_s12 }
  0xeb   : > { %v3064_v18 = vpop.permute.xlu1 %1618 }
  0xee   : > { %1098 = vrot.lane.b32.xlu1 %v1074_v13, %s2610_s20  ;;  %1274 = vrot.lane.b32.xlu0 %v1256_v15, %s2606_s25  ;;  %v1354_v13 = vmul.f32 %v3020_v50, %v1332_v30 }
  0xef   : > { %v3074_v8 = vpop.permute.xlu1 %1508 }
  0xf2   : > { %1280 = vrot.lane.b32.xlu1 %v1259_v5, %s2606_s25  ;;  %1192 = vrot.lane.b32.xlu0 %v1168_v3, %s2608_s12 }
  0xf3   : > { %v3082_v5 = vpop.permute.xlu1 %1598 }
  0xf6   : > { %1371 = vrot.lane.b32.xlu1 %v1351_v2, %s2604_s21  ;;  %1463 = vrot.lane.b32.xlu0 %v1443_v1, %s2602_s18  ;;  %v416_v11 = vpop.f32.mrb[0].mxu1  ;;  %v1679_v2 = vld [vmem:[%s3639_s4] sm:$0xff]  ;;  %v1680_v1 = vld [vmem:[%s3639_s4 + $0x8] sm:$0xff] }
  0xf7   : > { %v417_v6 = vadd.f32 %v416_v11, %v314_v59  ;;  %v418_v14 = vpop.f32.mrb[1].mxu1  ;;  %v3093_v38 = vpop.permute.xlu1 %1600 }
  0xf8   : > { %v419_v15 = vadd.f32 %v418_v14, %v314_v59  ;;  %v1516_v14 = vmul.f32 0.0, %v3074_v8 }
  0xfa   : > { %1377 = vrot.lane.b32.xlu1 %v1354_v13, %s2604_s21  ;;  %1469 = vrot.lane.b32.xlu0 %v1446_v10, %s2602_s18  ;;  %v427_v3 = vpop.f32.mrb[2].mxu1  ;;  %v1262_v13 = vmul.f32 %v2998_v34, %v1237_v17  ;;  %v1538_v30 = vmul.f32 %v3040_v0, %v1516_v14 }
  0xfb   : > { %v428_v11 = vadd.f32 %v427_v3, %v319_v61  ;;  %v429_v9 = vpop.f32.mrb[3].mxu1  ;;  %v1535_v3 = vmul.f32 %v3036_v62, %v1516_v14 }
  0xfc   : > { %v430_v43 = vadd.f32 %v429_v9, %v319_v61  ;;  %v3099_v9 = vmul.f32 0.0, %v3093_v38  ;;  %v1449_v61 = vmul.f32 %v3014_v47, %v1424_v19  ;;  %v1681_v19 = vld [vmem:[%s3639_s4 + $0x10] sm:$0xff] }
  0xfe   : > { %1684 = vperm.xlu1 %2531, %v1679_v2   ;;  %1689 = vperm.xlu0 %2530, %v1680_v1   ;;  %v438_v59 = vpop.f32.mrb[4].mxu1  ;;  %v1627_v17 = vmul.f32 %v3055_v16, %v3099_v9  ;;  %v1541_v2 = vmul.f32 %v3022_v51, %v1516_v14 }
  0xff   : > { %v440_v10 = vpop.f32.mrb[5].mxu1 }
 0x100   : > { %v441_v35 = vadd.f32 %v440_v10, %v2966_v20 }
 0x102   : > { %1286 = vrot.lane.b32.xlu1 %v1262_v13, %s2606_s25  ;;  %1383 = vrot.lane.b32.xlu0 %v1357_v46, %s2604_s21  ;;  %v1630_v46 = vmul.f32 %v3064_v18, %v3099_v9  ;;  %v918_v13 = vpop.permute.xlu1 %917 }
 0x106   : > { %1475 = vrot.lane.b32.xlu1 %v1449_v61, %s2602_s18  ;;  %1555 = vrot.lane.b32.xlu0 %v1535_v3, %s2600_s23  ;;  %v923_v52 = vpop.permute.xlu1 %922 }
 0x10a   : > { %1647 = vrot.lane.b32.xlu1 %v1627_v17, %s2601_s17  ;;  %1561 = vrot.lane.b32.xlu0 %v1538_v30, %s2600_s23 }
 0x10e   : > { %1653 = vrot.lane.b32.xlu1 %v1630_v46, %s2601_s17  ;;  %1694 = vperm.xlu0 %2530, %v1681_v19   ;;  %v3127_v19 = vsel %vm1044_vm3, %v2972_v12, %v3000_v36  ;;  %v439_v12 = vadd.f32 %v438_v59, %v2966_v20 }
 0x112   : > { %1567 = vrot.lane.b32.xlu1 %v1541_v2, %s2600_s23 }
 0x12e   : > { %v887_v1 = vpop.f32.mrb[0].mxu0 }
 0x12f   : > { %v2409_v3 = vadd.f32 %v887_v1, %v417_v6  ;;  %v889_v61 = vpop.f32.mrb[1].mxu0  ;;  %v3132_v6 = vsel %vm1138_vm4, %v2981_v26, %v3012_v45 }
 0x130   : > { %v2411_v17 = vadd.f32 %v889_v61, %v419_v15  ;;  %v3137_v15 = vsel %vm1232_vm5, %v2994_v32, %v3024_v54 }
 0x131   : > { %v906_v30 = vmax.f32 %v2409_v3, 0.0 }
 0x132   : > { %v3122_v46 = vmax.f32 %v2411_v17, 0.0  ;;  %v894_v14 = vpop.f32.mrb[2].mxu0 }
 0x133   : > { %v3139_v25 = vmul.f32 %v918_v13, %v906_v30  ;;  %v2413_v2 = vadd.f32 %v894_v14, %v428_v11  ;;  %v896_v1 = vpop.f32.mrb[3].mxu0  ;;  %v1050_v3 = vmul.f32 %v3127_v19, %v906_v30  ;;  %v956_v61 = vmul.f32 %v3120_v42, %v906_v30 }
 0x134   : > { %v3145_v17 = vmul.f32 %v918_v13, %v3122_v46  ;;  %v2415_v26 = vadd.f32 %v896_v1, %v430_v43  ;;  %v1144_v53 = vmul.f32 %v3132_v6, %v906_v30  ;;  %v1238_v14 = vmul.f32 %v3137_v15, %v906_v30 }
 0x135   : > { %v3148_v28 = vmax.f32 %v2413_v2, 0.0  ;;  %v1069_v32 = vmul.f32 %v2974_v23, %v1050_v3  ;;  %v975_v11 = vmul.f32 %v2970_v22, %v956_v61  ;;  %v1514_v20 = vmul.f32 %v3018_v49, %v906_v30 }
 0x136   : > { %v3154_v57 = vmax.f32 %v2415_v26, 0.0  ;;  %v901_v59 = vpop.f32.mrb[4].mxu0  ;;  %v1330_v10 = vmul.f32 %v3002_v37, %v906_v30  ;;  %v1163_v61 = vmul.f32 %v2991_v31, %v1144_v53  ;;  %v1257_v26 = vmul.f32 %v3004_v39, %v1238_v14 }
 0x137   : > { %v3157_v43 = vmul.f32 %v923_v52, %v3148_v28  ;;  %v2417_v13 = vadd.f32 %v901_v59, %v439_v12  ;;  %v903_v1 = vpop.f32.mrb[5].mxu0  ;;  %1088 = vrot.lane.b32.xlu0 %v1069_v32, %s2610_s20  ;;  %994 = vrot.lane.b32.xlu1 %v975_v11, %s2614_s22  ;;  %v1418_v12 = vsel %vm1198_vm6, %v3010_v44, %v3047_v7 }
 0x138   : > { %v3162_v2 = vmul.f32 %v923_v52, %v3154_v57  ;;  %v2419_v3 = vadd.f32 %v903_v1, %v441_v35  ;;  %v1602_v32 = vsel %vm1010_vm7, %v3082_v5, %v3093_v38  ;;  %v1510_v35 = vsel %vm1104_vm8, %v3018_v49, %v3074_v8 }
 0x139   : > { %v1533_v52 = vmul.f32 %v3036_v62, %v1514_v20  ;;  %v1349_v53 = vmul.f32 %v3016_v48, %v1330_v10  ;;  %v1607_v11 = vmul.f32 %v1602_v32, %v3122_v46  ;;  %v1606_v7 = vmul.f32 %v3082_v5, %v906_v30 }
 0x13a   : > { %3666 = vst [vmem:[#allocation14_spill] sm:$0xff] %v3162_v2  ;;  %v1422_v14 = vmul.f32 %v3010_v44, %v906_v30  ;;  %v1423_v38 = vmul.f32 %v1418_v12, %v3122_v46  ;;  %v1515_v59 = vmul.f32 %v1510_v35, %v3122_v46  ;;  %v1239_v20 = vmul.f32 %v3024_v54, %v3122_v46 }
 0x13b   : > { %1182 = vrot.lane.b32.xlu0 %v1163_v61, %s2608_s12  ;;  %1276 = vrot.lane.b32.xlu1 %v1257_v26, %s2606_s25  ;;  %v1625_v8 = vmul.f32 %v3055_v16, %v1606_v7  ;;  %v957_v10 = vmul.f32 %v2985_v27, %v3122_v46  ;;  %v3194_v30 = vmax.f32 %v2417_v13, 0.0  ;;  %v3199_v61 = vsel %vm1292_vm9, %v3002_v37, %v3034_v60 }
 0x13c   : > { %v1441_v1 = vmul.f32 %v3028_v56, %v1422_v14  ;;  %v1331_v26 = vmul.f32 %v3199_v61, %v3122_v46  ;;  %v3210_v7 = vmul.f32 %v1602_v32, %v3154_v57  ;;  %v3213_v60 = vmul.f32 %v1418_v12, %v3154_v57 }
 0x13d   : > { %v976_v13 = vmul.f32 %v2970_v22, %v957_v10  ;;  %v3215_v14 = vmax.f32 %v2419_v3, 0.0  ;;  %v3232_v3 = vmul.f32 %v3137_v15, %v3194_v30 }
 0x13e   : > { %v1350_v22 = vmul.f32 %v3016_v48, %v1331_v26  ;;  %v1626_v48 = vmul.f32 %v3055_v16, %v1607_v11  ;;  %v1052_v16 = vmul.f32 %v3127_v19, %v3148_v28  ;;  %v1146_v11 = vmul.f32 %v3132_v6, %v3148_v28 }
 0x13f   : > { %1551 = vrot.lane.b32.xlu0 %v1533_v52, %s2600_s23  ;;  %1367 = vrot.lane.b32.xlu1 %v1349_v53, %s2604_s21  ;;  %v1051_v52 = vmul.f32 %v3000_v36, %v3122_v46  ;;  %v1258_v53 = vmul.f32 %v3004_v39, %v1239_v20  ;;  %v1145_v20 = vmul.f32 %v3012_v45, %v3122_v46 }
 0x140   : > { %v3235_v10 = vmul.f32 %v1418_v12, %v3215_v14  ;;  %v3238_v2 = vmul.f32 %v1510_v35, %v3215_v14  ;;  %v3248_v26 = vmul.f32 %v3199_v61, %v3215_v14  ;;  %v3251_v12 = vmul.f32 %v1602_v32, %v3215_v14 }
 0x141   : > { %v1070_v39 = vmul.f32 %v2974_v23, %v1051_v52  ;;  %v958_v23 = vmul.f32 %v3120_v42, %v3148_v28  ;;  %v1164_v46 = vmul.f32 %v2991_v31, %v1145_v20  ;;  %v1442_v52 = vmul.f32 %v3028_v56, %v1423_v38 }
 0x142   : > { %v1072_v31 = vmul.f32 %v2968_v21, %v1052_v16  ;;  %v1534_v32 = vmul.f32 %v3036_v62, %v1515_v59  ;;  %v1166_v56 = vmul.f32 %v2996_v33, %v1146_v11  ;;  %v1333_v38 = vmul.f32 %v3002_v37, %v3148_v28 }
 0x143   : > { %1643 = vrot.lane.b32.xlu0 %v1625_v8, %s2601_s17  ;;  %1459 = vrot.lane.b32.xlu1 %v1441_v1, %s2602_s18  ;;  %v3218_v8 = vmul.f32 %v1510_v35, %v3154_v57  ;;  %v3222_v1 = vmul.f32 %v3127_v19, %v3194_v30  ;;  %v978_v35 = vmul.f32 %v3038_v63, %v958_v23 }
 0x144   : > { %v1517_v62 = vmul.f32 %v3018_v49, %v3148_v28 }
 0x146   : > { %v1536_v59 = vmul.f32 %v3040_v0, %v1517_v62  ;;  %v1445_v62 = vmul.f32 %v3032_v58, %v3213_v60  ;;  %v1075_v60 = vmul.f32 %v2976_v24, %v3222_v1  ;;  %v1335_v1 = vmul.f32 %v3002_v37, %v3194_v30 }
 0x147   : > { %1278 = vrot.lane.b32.xlu0 %v1258_v53, %s2606_s25  ;;  %996 = vrot.lane.b32.xlu1 %v976_v13, %s2614_s22  ;;  %v1240_v53 = vmul.f32 %v3137_v15, %v3148_v28  ;;  %v1352_v15 = vmul.f32 %v3020_v50, %v1333_v38  ;;  %v1425_v13 = vmul.f32 %v3010_v44, %v3148_v28 }
 0x148   : > { %v1448_v37 = vmul.f32 %v3014_v47, %v3235_v10  ;;  %v1149_v10 = vmul.f32 %v3012_v45, %v3215_v14 }
 0x149   : > { %v1260_v19 = vmul.f32 %v3008_v41, %v1240_v53  ;;  %v1444_v20 = vmul.f32 %v3032_v58, %v1425_v13  ;;  %v1055_v13 = vmul.f32 %v3000_v36, %v3215_v14 }
 0x14b   : > { %1369 = vrot.lane.b32.xlu0 %v1350_v22, %s2604_s21  ;;  %1090 = vrot.lane.b32.xlu1 %v1070_v39, %s2610_s20  ;;  %v1609_v22 = vmul.f32 %v3082_v5, %v3148_v28 }
 0x14d   : > { %v1628_v23 = vmul.f32 %v3064_v18, %v1609_v22  ;;  %v1243_v22 = vmul.f32 %v3024_v54, %v3215_v14 }
 0x14f   : > { %1645 = vrot.lane.b32.xlu0 %v1626_v48, %s2601_s17  ;;  %1184 = vrot.lane.b32.xlu1 %v1164_v46, %s2608_s12  ;;  %v1241_v48 = vmul.f32 %v3024_v54, %v3154_v57  ;;  %v959_v46 = vmul.f32 %v2985_v27, %v3154_v57 }
 0x151   : > { %v979_v16 = vmul.f32 %v3038_v63, %v959_v46 }
 0x153   : > { %1000 = vrot.lane.b32.xlu0 %v978_v35, %s2614_s22  ;;  %1461 = vrot.lane.b32.xlu1 %v1442_v52, %s2602_s18  ;;  %v3293_v35 = vpop.permute.xlu0 %992  ;;  %v1261_v52 = vmul.f32 %v3008_v41, %v1241_v48  ;;  %v1147_v41 = vmul.f32 %v3012_v45, %v3154_v57  ;;  %v1710_v45 = vld [vmem:[%s3642_s7] sm:$0xff] }
 0x154   : > { %v3283_v39 = vpop.permute.xlu1 %998 }
 0x155   : > { %v1167_v38 = vmul.f32 %v2996_v33, %v1147_v41  ;;  %v1537_v33 = vmul.f32 %v3040_v0, %v3218_v8  ;;  %v1076_v0 = vmul.f32 %v2976_v24, %v1055_v13  ;;  %v1263_v8 = vmul.f32 %v2998_v34, %v3232_v3 }
 0x156   : > { %v1427_v24 = vmul.f32 %v3010_v44, %v3194_v30 }
 0x157   : > { %1094 = vrot.lane.b32.xlu0 %v1072_v31, %s2610_s20  ;;  %1553 = vrot.lane.b32.xlu1 %v1534_v32, %s2600_s23  ;;  %v1334_v31 = vmul.f32 %v3199_v61, %v3154_v57  ;;  %v1053_v32 = vmul.f32 %v3000_v36, %v3154_v57  ;;  %v3307_v11 = vpop.permute.xlu0 %1086  ;;  %v1264_v36 = vmul.f32 %v2998_v34, %v1243_v22 }
 0x158   : > { %v3297_v28 = vpop.permute.xlu1 %1092  ;;  %v1447_v54 = vmul.f32 %v3014_v47, %v1427_v24  ;;  %v961_v34 = vmul.f32 %v2985_v27, %v3215_v14  ;;  %v1633_v27 = vmul.f32 %v3026_v55, %v3099_v9 }
 0x159   : > { %v1353_v53 = vmul.f32 %v3020_v50, %v1334_v31  ;;  %v960_v50 = vmul.f32 %v3120_v42, %v3194_v30 }
 0x15b   : > { %1188 = vrot.lane.b32.xlu0 %v1166_v56, %s2608_s12  ;;  %1282 = vrot.lane.b32.xlu1 %v1260_v19, %s2606_s25  ;;  %v1073_v56 = vmul.f32 %v2968_v21, %v1053_v32  ;;  %v3317_v61 = vpop.permute.xlu0 %1004  ;;  %v1629_v19 = vmul.f32 %v3064_v18, %v3210_v7  ;;  %v981_v57 = vmul.f32 %v3044_v4, %v960_v50 }
 0x15c   : > { %v3313_v63 = vpop.permute.xlu1 %1180  ;;  %v1519_v7 = vmul.f32 %v3018_v49, %v3194_v30  ;;  %v1170_v32 = vmul.f32 %v2988_v29, %v1149_v10 }
 0x15f   : > { %1373 = vrot.lane.b32.xlu0 %v1352_v15, %s2604_s21  ;;  %1557 = vrot.lane.b32.xlu1 %v1536_v59, %s2600_s23  ;;  %v1148_v15 = vmul.f32 %v3132_v6, %v3194_v30  ;;  %v3333_v18 = vpop.permute.xlu0 %1186  ;;  %v1539_v6 = vmul.f32 %v3022_v51, %v1519_v7 }
 0x160   : > { %v3326_v21 = vpop.permute.xlu1 %1098 }
 0x161   : > { %v1169_v42 = vmul.f32 %v2988_v29, %v1148_v15  ;;  %v1632_v29 = vmul.f32 %v3026_v55, %v3251_v12 }
 0x163   : > { %1465 = vrot.lane.b32.xlu0 %v1444_v20, %s2602_s18  ;;  %1649 = vrot.lane.b32.xlu1 %v1628_v23, %s2601_s17  ;;  %v3346_v58 = vpop.permute.xlu0 %1274  ;;  %v1355_v23 = vmul.f32 %v3006_v40, %v1335_v1 }
 0x164   : > { %v3342_v59 = vpop.permute.xlu1 %1280 }
 0x167   : > { %1284 = vrot.lane.b32.xlu0 %v1261_v52, %s2606_s25  ;;  %1002 = vrot.lane.b32.xlu1 %v979_v16, %s2614_s22  ;;  %v3364_v20 = vpop.permute.xlu0 %1192  ;;  %v1540_v52 = vmul.f32 %v3022_v51, %v3238_v2  ;;  %v982_v16 = vmul.f32 %v3044_v4, %v961_v34  ;;  %v1356_v51 = vmul.f32 %v3006_v40, %v3248_v26 }
 0x168   : > { %v3355_v49 = vpop.permute.xlu1 %1371  ;;  %v1611_v2 = vmul.f32 %v3082_v5, %v3194_v30 }
 0x16a   : > { %v1631_v41 = vmul.f32 %v3026_v55, %v1611_v2 }
 0x16b   : > { %1375 = vrot.lane.b32.xlu0 %v1353_v53, %s2604_s21  ;;  %1096 = vrot.lane.b32.xlu1 %v1073_v56, %s2610_s20  ;;  %v3374_v48 = vpop.permute.xlu0 %1463 }
 0x16c   : > { %v3372_v3 = vpop.permute.xlu1 %1377 }
 0x16f   : > { %1651 = vrot.lane.b32.xlu0 %v1629_v19, %s2601_s17  ;;  %1190 = vrot.lane.b32.xlu1 %v1167_v38, %s2608_s12  ;;  %v3387_v44 = vpop.permute.xlu0 %1469 }
 0x173   : > { %1006 = vrot.lane.b32.xlu0 %v981_v57, %s2614_s22  ;;  %1467 = vrot.lane.b32.xlu1 %v1445_v62, %s2602_s18 }
 0x177   : > { %1194 = vrot.lane.b32.xlu0 %v1169_v42, %s2608_s12  ;;  %1559 = vrot.lane.b32.xlu1 %v1537_v33, %s2600_s23 }
 0x17b   : > { %1563 = vrot.lane.b32.xlu0 %v1539_v6, %s2600_s23  ;;  %1100 = vrot.lane.b32.xlu1 %v1075_v60, %s2610_s20 }
 0x17d   : > { %v3383_v46 = vpop.permute.xlu1 %1684  ;;  %v3398_v47 = vpop.permute.xlu0 %1689 }
 0x17f   : > { %1102 = vrot.lane.b32.xlu0 %v1076_v0, %s2610_s20  ;;  %1288 = vrot.lane.b32.xlu1 %v1263_v8, %s2606_s25  ;;  %s2359_s20 = sshll.u32 %s2682_s9, 8 }
 0x180   : > { %s3593_s19 = scalar_lea.hbm %s3643_s8, %s2359_s20 }
 0x181   : > { %v3400_v31 = vpop.permute.xlu1 %1286  ;;  %v3410_v4 = vpop.permute.xlu0 %1383 }
 0x183   : > { %1290 = vrot.lane.b32.xlu0 %v1264_v36, %s2606_s25  ;;  %1379 = vrot.lane.b32.xlu1 %v1355_v23, %s2604_s21 }
 0x185   : > { %v3412_v9 = vpop.permute.xlu1 %1475  ;;  %v1556_v53 = vpop.permute.xlu0 %1555 }
 0x187   : > { %1473 = vrot.lane.b32.xlu0 %v1448_v37, %s2602_s18  ;;  %1471 = vrot.lane.b32.xlu1 %v1447_v54, %s2602_s18  ;;  %s2615_s18 = smov [#allocation2]  }
 0x188   : > { %s2537_s25 = sshll.u32 %s2615_s18, 4  ;;  %s2538_s25 = int_to_ptr.vmem [resolvable:$false] %s2537_s25 }
 0x189   : > { %v1648_v56 = vpop.permute.xlu1 %1647  ;;  %v3422_v40 = vpop.permute.xlu0 %1561 }
 0x18b   : > { %1565 = vrot.lane.b32.xlu0 %v1540_v52, %s2600_s23  ;;  %1008 = vrot.lane.b32.xlu1 %v982_v16, %s2614_s22  ;;  %s2539_s23 = scalar_lea.vmem %s2538_s25, 512 }
 0x18d   : > { %v3424_v26 = vpop.permute.xlu1 %1653  ;;  %v3426_v19 = vpop.permute.xlu0 %1694 }
 0x18f   : > { %1659 = vrot.lane.b32.xlu0 %v1633_v27, %s2601_s17  ;;  %1196 = vrot.lane.b32.xlu1 %v1170_v32, %s2608_s12 }
 0x191   : > { %v3428_v38 = vpop.permute.xlu1 %1567 }
 0x193   : > { %1713 = vperm.xlu0 %2530, %v1710_v45   ;;  %1381 = vrot.lane.b32.xlu1 %v1356_v51, %s2604_s21  ;;  %s296_s21 = sand.u32 1, %s2587_s28  }
 0x194   : > { %s2343_s12 = sshll.u32 %s296_s21, 4  ;;  %s2266_s9 = scalar_lea.sflag [#allocation3], %s296_s21 }
 0x195   : > { %s298_s22 = scalar_lea.vmem [#allocation2], %s2343_s12 }
 0x196   : > { %s2280_s26 = sshll.u32 %s298_s22, 4  ;;  %s3595_s26 = int_to_ptr.vmem [resolvable:$true] %s2280_s26 }
 0x197   : > { %1657 = vrot.lane.b32.xlu1 %v1632_v29, %s2601_s17  ;;  %s2533_s24 = scalar_lea.vmem %s3595_s26, 256  ;;  %p2540_p0 = scmp.lt.s32.totalorder %s3595_s26, %s2538_s25 }
 0x198   : > { %p2534_p11 = scmp.ne.s32.totalorder %s3595_s26, %s2533_s24  ;;  %p2541_p1 = scmp.lt.s32.totalorder %s2539_s23, %s2533_s24 }
 0x19a   : > { %p2535_p12 = pnand %p2534_p11, %p2699_p5  ;;  %p2542_p2 = por %p2541_p1, %p2540_p0 }
 0x19b   : > { %1655 = vrot.lane.b32.xlu1 %v1631_v41, %s2601_s17 }
 0x19c   : > { %p2536_p13 = pneg %p2535_p12 }
 0x19e   : > { %p2543_p3 = pnand %p2542_p2, %p2536_p13 }
 0x1a9   : > { %v1089_v12 = vpop.permute.xlu0 %1088  ;;  %v995_v50 = vpop.permute.xlu1 %994 }
 0x1aa   : > { %v1011_v54 = vsel %vm1010_vm7, %v3293_v35, %v995_v50  ;;  %v1105_v35 = vsel %vm1104_vm8, %v3307_v11, %v1089_v12 }
 0x1ad   : > { %v1183_v57 = vpop.permute.xlu0 %1182  ;;  %v1277_v5 = vpop.permute.xlu1 %1276 }
 0x1b1   : > { %v1552_v62 = vpop.permute.xlu0 %1551  ;;  %v1368_v15 = vpop.permute.xlu1 %1367 }
 0x1b5   : > { %v1644_v42 = vpop.permute.xlu0 %1643  ;;  %v1460_v33 = vpop.permute.xlu1 %1459 }
 0x1b9   : > { %v1279_v7 = vpop.permute.xlu0 %1278  ;;  %v997_v55 = vpop.permute.xlu1 %996 }
 0x1ba   : > { %v1012_v6 = vsel %vm1010_vm7, %v995_v50, %v997_v55  ;;  %v1294_v37 = vsel %vm1292_vm9, %v1277_v5, %v1279_v7 }
 0x1bb   : > { %v1024_v8 = vadd.f32 %v1012_v6, %v3145_v17  ;;  %v1023_v17 = vadd.f32 %v1011_v54, %v3139_v25 }
 0x1bd   : > { %v1370_v60 = vpop.permute.xlu0 %1369  ;;  %v1091_v13 = vpop.permute.xlu1 %1090  ;;  %v1117_v50 = vadd.f32 %v1105_v35, %v1023_v17 }
 0x1be   : > { %v1106_v0 = vsel %vm1104_vm8, %v1089_v12, %v1091_v13  ;;  %v1386_v10 = vsel %vm1232_vm5, %v1370_v60, %v3355_v49  ;;  %v1199_v49 = vsel %vm1198_vm6, %v3313_v63, %v1183_v57 }
 0x1bf   : > { %v1118_v22 = vadd.f32 %v1106_v0, %v1024_v8  ;;  %v1211_v13 = vadd.f32 %v1199_v49, %v1117_v50  ;;  %v1293_v8 = vsel %vm1292_vm9, %v3346_v58, %v1277_v5 }
 0x1c1   : > { %v1646_v1 = vpop.permute.xlu0 %1645  ;;  %v1185_v36 = vpop.permute.xlu1 %1184 }
 0x1c2   : > { %v1200_v23 = vsel %vm1198_vm6, %v1183_v57, %v1185_v36  ;;  %v1662_v7 = vsel %vm950_vm2, %v1646_v1, %v1648_v56 }
 0x1c3   : > { %v1212_v24 = vadd.f32 %v1200_v23, %v1118_v22  ;;  %v1305_v22 = vadd.f32 %v1293_v8, %v1211_v13 }
 0x1c5   : > { %v1306_v34 = vadd.f32 %v1294_v37, %v1212_v24  ;;  %v1001_v52 = vpop.permute.xlu0 %1000  ;;  %v1462_v16 = vpop.permute.xlu1 %1461 }
 0x1c6   : > { %v1478_v32 = vsel %vm1138_vm4, %v1462_v16, %v3374_v48  ;;  %v1477_v11 = vsel %vm1138_vm4, %v1460_v33, %v1462_v16  ;;  %v1013_v37 = vsel %vm1010_vm7, %v3283_v39, %v1001_v52  ;;  %v3667_v39 = vld [vmem:[#allocation14_spill] sm:$0xff] }
 0x1c7   : > { %v1398_v27 = vadd.f32 %v1386_v10, %v1306_v34  ;;  %v1025_v33 = vadd.f32 %v1013_v37, %v3157_v43 }
 0x1c9   : > { %v1490_v45 = vadd.f32 %v1478_v32, %v1398_v27  ;;  %v1095_v51 = vpop.permute.xlu0 %1094  ;;  %v1554_v29 = vpop.permute.xlu1 %1553 }
 0x1ca   : > { %v1570_v2 = vsel %vm1044_vm3, %v1554_v29, %v1556_v53  ;;  %v1385_v53 = vsel %vm1232_vm5, %v1368_v15, %v1370_v60  ;;  %v1569_v23 = vsel %vm1044_vm3, %v1552_v62, %v1554_v29  ;;  %v1107_v58 = vsel %vm1104_vm8, %v3297_v28, %v1095_v51 }
 0x1cb   : > { %v1582_v41 = vadd.f32 %v1570_v2, %v1490_v45  ;;  %v1397_v56 = vadd.f32 %v1385_v53, %v1305_v22  ;;  %v1661_v15 = vsel %vm950_vm2, %v1644_v42, %v1646_v1  ;;  %v1119_v27 = vadd.f32 %v1107_v58, %v1025_v33 }
 0x1cd   : > { %v1674_v55 = vadd.f32 %v1662_v7, %v1582_v41  ;;  %v1189_v25 = vpop.permute.xlu0 %1188  ;;  %v1283_v6 = vpop.permute.xlu1 %1282  ;;  %v1489_v63 = vadd.f32 %v1477_v11, %v1397_v56 }
 0x1ce   : > { %v1201_v62 = vsel %vm1198_vm6, %v3333_v18, %v1189_v25  ;;  %v1295_v2 = vsel %vm1292_vm9, %v3342_v59, %v1283_v6 }
 0x1cf   : > { %v1581_v54 = vadd.f32 %v1569_v23, %v1489_v63  ;;  %v1213_v32 = vadd.f32 %v1201_v62, %v1119_v27  ;;  %v1698_v42 = vadd.f32 %v3383_v46, %v1674_v55 }
 0x1d1   : > { %v1374_v48 = vpop.permute.xlu0 %1373  ;;  %v1558_v0 = vpop.permute.xlu1 %1557  ;;  %v1673_v16 = vadd.f32 %v1661_v15, %v1581_v54  ;;  %v1307_v35 = vadd.f32 %v1295_v2, %v1213_v32  ;;  %v1704_v13 = vmax.f32 %v1698_v42, 0.0 }
 0x1d3   : > { %v1720_v63 = vand.u32 4294901760, %v1704_v13 }
 0x1d5   : > { %v1466_v12 = vpop.permute.xlu0 %1465  ;;  %v1650_v36 = vpop.permute.xlu1 %1649  ;;  %v3490_v15 = vsub.f32 %v1704_v13, %v1720_v63 }
 0x1d9   : > { %v1285_v57 = vpop.permute.xlu0 %1284  ;;  %v1003_v24 = vpop.permute.xlu1 %1002 }
 0x1da   : > { %v1014_v5 = vsel %vm1010_vm7, %v1001_v52, %v1003_v24  ;;  %v1697_v52 = vadd.f32 %v3383_v46, %v1673_v16  ;;  %v1296_v18 = vsel %vm1292_vm9, %v1283_v6, %v1285_v57 }
 0x1db   : > { %v1026_v17 = vadd.f32 %v1014_v5, %v3667_v39 }
 0x1dc   : > { %v1703_v49 = vmax.f32 %v1697_v52, 0.0 }
 0x1dd   : > { %v1376_v60 = vpop.permute.xlu0 %1375  ;;  %v1097_v34 = vpop.permute.xlu1 %1096 }
 0x1de   : > { %v1108_v10 = vsel %vm1104_vm8, %v1095_v51, %v1097_v34  ;;  %v1387_v51 = vsel %vm1232_vm5, %v1374_v48, %v1376_v60  ;;  %v1388_v46 = vsel %vm1232_vm5, %v1376_v60, %v3372_v3  ;;  %v1722_v11 = vand.u32 4294901760, %v1703_v49 }
 0x1df   : > { %v1120_v45 = vadd.f32 %v1108_v10, %v1026_v17 }
 0x1e0   : > { %v3488_v5 = vsub.f32 %v1703_v49, %v1722_v11 }
 0x1e1   : > { %v1652_v28 = vpop.permute.xlu0 %1651  ;;  %v1191_v29 = vpop.permute.xlu1 %1190 }
 0x1e2   : > { %v1202_v43 = vsel %vm1198_vm6, %v1189_v25, %v1191_v29  ;;  %v1399_v25 = vadd.f32 %v1387_v51, %v1307_v35  ;;  %v1664_v24 = vsel %vm950_vm2, %v1652_v28, %v3424_v26  ;;  %v1812_v26 = vand.u32 4294901760, %v3488_v5 }
 0x1e3   : > { %v1214_v1 = vadd.f32 %v1202_v43, %v1120_v45 }
 0x1e5   : > { %v1308_v41 = vadd.f32 %v1296_v18, %v1214_v1  ;;  %v3471_v50 = vpop.permute.xlu0 %1006  ;;  %v1468_v7 = vpop.permute.xlu1 %1467  ;;  %v3668_v1 = vld [vmem:[#allocation13_spill] sm:$0xff] }
 0x1e6   : > { %v1479_v55 = vsel %vm1138_vm4, %v1466_v12, %v1468_v7  ;;  %v1480_v59 = vsel %vm1138_vm4, %v1468_v7, %v3387_v44  ;;  %v1663_v12 = vsel %vm950_vm2, %v1650_v36, %v1652_v28  ;;  %v1806_v36 = vand.u32 4294901760, %v3490_v15 }
 0x1e7   : > { %v1400_v8 = vadd.f32 %v1388_v46, %v1308_v41  ;;  %v1491_v6 = vadd.f32 %v1479_v55, %v1399_v25  ;;  %v1813_v28 = vsub.f32 %v3488_v5, %v1812_v26  ;;  %v934_v2 = vmul.f32 %v3668_v1, %v3194_v30 }
 0x1e8   : > { %v1015_v18 = vsel %vm1010_vm7, %v3317_v61, %v3471_v50 }
 0x1e9   : > { %v1492_v53 = vadd.f32 %v1480_v59, %v1400_v8  ;;  %v3478_v48 = vpop.permute.xlu0 %1194  ;;  %v1560_v22 = vpop.permute.xlu1 %1559  ;;  %v1027_v55 = vadd.f32 %v1015_v18, %v934_v2  ;;  %v1814_v8 = vand.u32 4294901760, %v1813_v28 }
 0x1ea   : > { %v1571_v56 = vsel %vm1044_vm3, %v1558_v0, %v1560_v22  ;;  %v1572_v23 = vsel %vm1044_vm3, %v1560_v22, %v3422_v40 }
 0x1eb   : > { %v1583_v3 = vadd.f32 %v1571_v56, %v1491_v6  ;;  %v1584_v57 = vadd.f32 %v1572_v23, %v1492_v53  ;;  %v935_v6 = vmul.f32 %v3668_v1, %v3215_v14 }
 0x1ed   : > { %v1675_v44 = vadd.f32 %v1663_v12, %v1583_v3  ;;  %v1676_v37 = vadd.f32 %v1664_v24, %v1584_v57  ;;  %v3486_v54 = vpop.permute.xlu0 %1563  ;;  %v1101_v58 = vpop.permute.xlu1 %1100 }
 0x1ee   : > { %v1109_v46 = vsel %vm1104_vm8, %v3326_v21, %v1101_v58  ;;  %v1203_v21 = vsel %vm1198_vm6, %v3364_v20, %v3478_v48 }
 0x1ef   : > { %v1699_v0 = vadd.f32 %v3398_v47, %v1675_v44  ;;  %v1700_v40 = vadd.f32 %v3398_v47, %v1676_v37  ;;  %v1807_v47 = vsub.f32 %v3490_v15, %v1806_v36  ;;  %v1121_v59 = vadd.f32 %v1109_v46, %v1027_v55 }
 0x1f1   : > { %v1705_v33 = vmax.f32 %v1699_v0, 0.0  ;;  %v1706_v60 = vmax.f32 %v1700_v40, 0.0  ;;  %v1289_v34 = vpop.permute.xlu1 %1288  ;;  %v1103_v62 = vpop.permute.xlu0 %1102  ;;  %v1808_v30 = vand.u32 4294901760, %v1807_v47  ;;  %v1215_v57 = vadd.f32 %v1203_v21, %v1121_v59 }
 0x1f2   : > { %v1110_v3 = vsel %vm1104_vm8, %v1101_v58, %v1103_v62  ;;  %v1297_v14 = vsel %vm1292_vm9, %v3400_v31, %v1289_v34 }
 0x1f3   : > { %v1726_v16 = vand.u32 4294901760, %v1705_v33  ;;  %v1724_v10 = vand.u32 4294901760, %v1706_v60  ;;  %v1309_v20 = vadd.f32 %v1297_v14, %v1215_v57 }
 0x1f5   : > { %v3496_v27 = vsub.f32 %v1705_v33, %v1726_v16  ;;  %v1380_v39 = vpop.permute.xlu1 %1379  ;;  %v3498_v17 = vpack.c.bf16 %v1724_v10, %v1720_v63  ;;  %v3500_v32 = vsub.f32 %v1706_v60, %v1724_v10  ;;  %v3502_v45 = vpack.c.bf16 %v1726_v16, %v1722_v11  ;;  %v1291_v51 = vpop.permute.xlu0 %1290 }
 0x1f6   : > { %v1298_v0 = vsel %vm1292_vm9, %v1289_v34, %v1291_v51 }
 0x1f7   : > { %2361 = vmatprep.subr.bf16.mxu1 %v3498_v17  ;;  %v1818_v29 = vand.u32 4294901760, %v3500_v32  ;;  %v1824_v52 = vand.u32 4294901760, %v3496_v27  ;;  %v2376_v42 = vpack.c.bf16 %v3500_v32, %v3490_v15  ;;  %v2378_v43 = vpack.c.bf16 %v3496_v27, %v3488_v5  ;;  %v3676_v5 = vld [vmem:[#allocation10_spill] sm:$0xff] }
 0x1f8   : > { %2363 = vmatpush1.bf16.msra.mxu1 %v3502_v45 }
 0x1f9   : > { %v1472_v35 = vpop.permute.xlu1 %1471  ;;  %v1819_v41 = vsub.f32 %v3500_v32, %v1818_v29  ;;  %v1825_v7 = vsub.f32 %v3496_v27, %v1824_v52  ;;  %v3521_v49 = vpack.c.bf16 %v1818_v29, %v1806_v36  ;;  %v3523_v13 = vpack.c.bf16 %v1824_v52, %v1812_v26  ;;  %v1474_v23 = vpop.permute.xlu0 %1473  ;;  %v3677_v27 = vld [vmem:[#allocation9_spill] sm:$0xff] }
 0x1fa   : > { %v1482_v16 = vsel %vm1138_vm4, %v1474_v23, %v3412_v9  ;;  %v1481_v62 = vsel %vm1138_vm4, %v1472_v35, %v1474_v23 }
 0x1fb   : > { %v1820_v25 = vand.u32 4294901760, %v1819_v41  ;;  %v1826_v61 = vand.u32 4294901760, %v1825_v7 }
 0x1fd   : > { %v1009_v53 = vpop.permute.xlu1 %1008  ;;  %v2368_v22 = vpack.c.bf16 %v1820_v25, %v1808_v30  ;;  %v2370_v11 = vpack.c.bf16 %v1826_v61, %v1814_v8  ;;  %v1566_v40 = vpop.permute.xlu0 %1565  ;;  %v3669_v61 = vld [vmem:[#allocation6_spill] sm:$0xff] }
 0x1fe   : > { %v1016_v56 = vsel %vm1010_vm7, %v3471_v50, %v1009_v53  ;;  %v1709_v50 = vld [vmem:[%s3641_s6] sm:$0xff]  ;;  %v1574_v29 = vsel %vm1044_vm3, %v1566_v40, %v3428_v38 }
 0x1ff   : > { %v1028_v63 = vadd.f32 %v1016_v56, %v935_v6  ;;  %v1718_v60 = vsel %vm1716_vm10, %v1709_v50, 0  ;;  %v3670_v56 = vld [vmem:[#allocation5_spill] sm:$0xff]  ;;  %v3672_v50 = vmov 0.0  }
 0x200   : > { %v3549_v10 = vand.u32 4294901760, %v1718_v60 }
 0x201   : > { %v1122_v12 = vadd.f32 %v1110_v3, %v1028_v63  ;;  %v1197_v24 = vpop.permute.xlu1 %1196  ;;  %v1660_v52 = vpop.permute.xlu0 %1659 }
 0x202   : > { %v1204_v44 = vsel %vm1198_vm6, %v3478_v48, %v1197_v24  ;;  %v1794_v2 = vsub.f32 %v1718_v60, %v3549_v10 }
 0x203   : > { %v1216_v37 = vadd.f32 %v1204_v44, %v1122_v12 }
 0x204   : > { %v1795_v46 = vand.u32 4294901760, %v1794_v2 }
 0x205   : > { %v1310_v58 = vadd.f32 %v1298_v0, %v1216_v37  ;;  %v1382_v33 = vpop.permute.xlu1 %1381  ;;  %v3673_v37 = vld [vmem:[#allocation11_spill] sm:$0xff] }
 0x206   : > { %v1389_v36 = vsel %vm1232_vm5, %v1380_v39, %v1382_v33  ;;  %v1390_v31 = vsel %vm1232_vm5, %v1382_v33, %v3410_v4  ;;  %v1573_v4 = vsel %vm1044_vm3, %v3486_v54, %v1566_v40  ;;  %v1796_v8 = vsub.f32 %v1794_v2, %v1795_v46 }
 0x207   : > { %v1401_v26 = vadd.f32 %v1389_v36, %v1309_v20  ;;  %v1402_v48 = vadd.f32 %v1390_v31, %v1310_v58 }
 0x208   : > { %v1797_v21 = vand.u32 4294901760, %v1796_v8 }
 0x209   : > { %v1493_v34 = vadd.f32 %v1481_v62, %v1401_v26  ;;  %v1494_v47 = vadd.f32 %v1482_v16, %v1402_v48  ;;  %v1658_v28 = vpop.permute.xlu1 %1657 }
 0x20a   : > { %v1666_v1 = vsel %vm950_vm2, %v1658_v28, %v1660_v52 }
 0x20b   : > { %v1586_v39 = vadd.f32 %v1574_v29, %v1494_v47  ;;  %v1585_v18 = vadd.f32 %v1573_v4, %v1493_v34 }
 0x20d   : > { %v1678_v9 = vadd.f32 %v1666_v1, %v1586_v39  ;;  %v1656_v51 = vpop.permute.xlu1 %1655 }
 0x20e   : > { %v1665_v35 = vsel %vm950_vm2, %v1656_v51, %v1658_v28 }
 0x20f   : > { %v1702_v41 = vadd.f32 %v3426_v19, %v1678_v9  ;;  %v1677_v7 = vadd.f32 %v1665_v35, %v1585_v18 }
 0x211   : > { %v1708_v30 = vmax.f32 %v1702_v41, 0.0  ;;  %v1701_v38 = vadd.f32 %v3426_v19, %v1677_v7  ;;  %v3671_v19 = vld [vmem:[#allocation12_spill] sm:$0xff] }
 0x213   : > { %v1707_v55 = vmax.f32 %v1701_v38, 0.0  ;;  %v1728_v25 = vand.u32 4294901760, %v1708_v30 }
 0x215   : > { %v1730_v54 = vand.u32 4294901760, %v1707_v55  ;;  %v2364_v59 = vpack.c.bf16 %v3669_v61, %v1728_v25  ;;  %v1829_v6 = vsub.f32 %v1708_v30, %v1728_v25 }
 0x217   : > { %v1835_v53 = vsub.f32 %v1707_v55, %v1730_v54  ;;  %2365 = vmatprep.subr.bf16.mxu1 %v2364_v59  ;;  %v2366_v23 = vpack.c.bf16 %v3670_v56, %v1730_v54  ;;  %v1830_v63 = vand.u32 4294901760, %v1829_v6 }
 0x219   : > { %v1836_v3 = vand.u32 4294901760, %v1835_v53  ;;  %2367 = vmatpush1.bf16.msra.mxu1 %v2366_v23  ;;  %v1831_v57 = vsub.f32 %v1829_v6, %v1830_v63  ;;  %v2396_v15 = vpack.c.bf16 %v3676_v5, %v1830_v63 }
 0x21a   : > { %2369 = vmatprep.subr.bf16.mxu1 %v2368_v22  ;;  %v3674_v22 = vld [vmem:[#allocation8_spill] sm:$0xff] }
 0x21b   : > { %v1832_v12 = vand.u32 4294901760, %v1831_v57  ;;  %v1837_v24 = vsub.f32 %v1835_v53, %v1836_v3  ;;  %v2380_v20 = vpack.c.bf16 %v3674_v22, %v1829_v6  ;;  %v2398_v32 = vpack.c.bf16 %v3677_v27, %v1836_v3 }
 0x21c   : > { %1798 = vmatmul.mubr.f32.vlgmr.msra.gmra.mrb[6].mxu1 %v1797_v21 }
 0x21d   : > { %2371 = vmatpush1.bf16.msra.mxu1 %v2370_v11  ;;  %v2372_v14 = vpack.c.bf16 %v3671_v19, %v1832_v12  ;;  %v1838_v44 = vand.u32 4294901760, %v1837_v24  ;;  %1908 = vmatprep.mubr.f32.mxu1 %v3672_v50  ;;  %v3675_v11 = vld [vmem:[#allocation7_spill] sm:$0xff] }
 0x21e   : > { %v2382_v40 = vpack.c.bf16 %v3675_v11, %v1835_v53 }
 0x21f   : > { %2373 = vmatprep.subr.bf16.mxu1 %v2372_v14  ;;  %v2374_v0 = vpack.c.bf16 %v3673_v37, %v1838_v44 }
 0x221   : > { %2375 = vmatpush1.bf16.msra.mxu1 %v2374_v0 }
 0x222   : > { %2377 = vmatprep.subr.bf16.mxu1 %v2376_v42  ;;  %v1714_v42 = vpop.permute.xlu0 %1713 }
 0x224   : > { %1910 = vmatmul.mubr.f32.vlgmr.msra.gmra.mrb[6].mxu1 %v3549_v10 }
 0x225   : > { %2379 = vmatpush1.bf16.msra.mxu1 %v2378_v43  ;;  %1996 = vmatprep.mubr.f32.mxu1 %v3672_v50 }
 0x226   : > { %2381 = vmatprep.subr.bf16.mxu1 %v2380_v20 }
 0x229   : > { %2383 = vmatpush1.bf16.msra.mxu1 %v2382_v40 }
 0x22a   : > { %2385 = vmatprep.subr.bf16.mxu1 %v3498_v17 }
 0x22c   : > { %1999 = vmatmul.mubr.f32.vlgmr.msra.gmra.mrb[6].mxu1 %v1794_v2 }
 0x22d   : > { %2387 = vmatpush1.bf16.msra.mxu1 %v3502_v45  ;;  %2077 = vmatprep.mubr.f32.mxu1 %v3672_v50 }
 0x22e   : > { %2389 = vmatprep.subr.bf16.mxu1 %v2364_v59 }
 0x231   : > { %2391 = vmatpush1.bf16.msra.mxu1 %v2366_v23 }
 0x232   : > { %2393 = vmatprep.subr.bf16.mxu1 %v3521_v49 }
 0x234   : > { %2081 = vmatmul.mubr.f32.vlgmr.msra.gmra.mrb[6].mxu1 %v1795_v46 }
 0x235   : > { %2395 = vmatpush1.bf16.msra.mxu1 %v3523_v13  ;;  %2175 = vmatprep.mubr.f32.mxu1 %v3672_v50 }
 0x236   : > { %2397 = vmatprep.subr.bf16.mxu1 %v2396_v15 }
 0x239   : > { %2399 = vmatpush1.bf16.msra.mxu1 %v2398_v32 }
 0x23a   : > { %2401 = vmatprep.subr.bf16.mxu1 %v3498_v17 }
 0x23c   : > { %2177 = vmatmul.mubr.f32.vlgmr.msra.gmra.mrb[6].mxu1 %v3549_v10 }
 0x23d   : > { %2403 = vmatpush1.bf16.msra.mxu1 %v3502_v45  ;;  %2255 = vmatprep.mubr.f32.mxu1 %v3672_v50 }
 0x23e   : > { %2405 = vmatprep.subr.bf16.mxu1 %v2364_v59 }
 0x241   : > { %2407 = vmatpush1.bf16.msra.mxu1 %v2366_v23 }
 0x244   : > { %2257 = vmatmul.mubr.f32.vlgmr.msra.gmra.mrb[6].mxu1 %v3549_v10 }
 0x317   : > { %v2258_v43 = vpop.f32.mrb[6].mxu1 }
 0x318   : > { %v2420_v49 = vadd.f32 %v2258_v43, %v1714_v42  ;;  %v2260_v17 = vpop.f32.mrb[7].mxu1 }
 0x319   : > { %v2421_v13 = vadd.f32 %v2260_v17, %v1714_v42 }
 0x31a   : > { %2263 = vst [vmem:[%s298_s22] sm:$0xff] %v2420_v49 }
 0x31b   : > { %2264 = vst [vmem:[%s298_s22 + $0x8] sm:$0xff] %v2421_v13 }
 0x31c   : > { %2546 = shalt.err (!%p2543_p3)
}
 0x31d   : > { %s2547_s17 = scalar_lea.hbm %s3593_s19, 256  ;;  %s2551_s20 = scalar_lea.hbm %s3643_s8, 512 }
 0x31e   : > { %p2548_p4 = scmp.ne.s32.totalorder %s3593_s19, %s2547_s17  ;;  %p2552_p9 = scmp.lt.u32.totalorder %s3593_s19, %s3643_s8 }
 0x31f   : > { %p2553_p10 = scmp.lt.u32.totalorder %s2551_s20, %s2547_s17  ;;  %p2555_p12 = scmp.lt.u32.totalorder %s2547_s17, %s3593_s19 }
 0x320   : > { %p2549_p7 = pnand %p2548_p4, %p2699_p5 }
 0x321   : > { %p2554_p11 = por %p2553_p10, %p2552_p9 }
 0x322   : > { %p2550_p8 = pneg %p2549_p7 }
 0x323   : > { %p2556_p13 = por %p2555_p12, %p2554_p11 }
 0x325   : > { %p2557_p0 = pnand %p2556_p13, %p2550_p8 }
 0x327   : > { %2560 = shalt.err (!%p2557_p0)
}
 0x328   : > { %2456 = dma.vmem_to_hbm [thread:$0]  (%p2699_p5), %s3595_s26, 256, %s3593_s19, %s2266_s9  }
 0x329 PF: > { %p2462_p1 = scmp.ge.s32.totalorder %s2595_s30, 2  ;;  %s2292_s13 = sand.u32 1, %s2583_s27  }
 0x32a   : > { %s2293_s24 = scalar_lea.sflag [#allocation3], %s2292_s13 }
 0x32b   : > { %p2459_p2 = pnand %p2462_p1, %p2703_p6 }
 0x32d   : > { %2578 = dma.done.wait (!%p2459_p2), %s2293_s24, 256  }
 0x32e   : > { %2580 = vsyncadd (!%p2459_p2), %s2293_s24, 4294967040  ;;  %p18_p3 = scmp.ge.s32.totalorder %s2686_s11, 4   ;;  %s3678_s27 = smov %s2587_s28 }
 0x32f   : > { %s3679_s28 = smov %s2591_s29  ;;  %s3680_s29 = smov %s2697_s14 }
 0x330   : > { %s3681_s30 = smov %s2686_s11  ;;  %20 = sbr.rel (!%p18_p3) target bundleno = 3 (0x3), region = 94 }
 0x337   :  { %2298 = vsyncpa [#allocation3], 1 }
 0x338   :  { %2300 = vsyncpa [#allocation3 + $0x1], 1 }

</bundles_post_ra>
